<compile_context>
chip_gen: v5e
topology: v5e:2x2
jax: 0.10.0
libtpu: 0.0.40
codegen_flags: <defaults>
</compile_context>

<pallas_src>
import functools
import math

import jax
import jax.numpy as jnp
from jax.experimental import pallas as pl
from jax.experimental.pallas import tpu as pltpu


ACT_DTYPE = jnp.bfloat16           # activations / weights feed the MXU in bf16

_MIN_VMEM = 48 * 1024 * 1024       # safe for v7x (64 MiB physical)
_MAX_VMEM = 96 * 1024 * 1024       # ~3/4 of v5e/v6e's 128 MiB
_VMEM_LIMIT = None


def _vmem_limit_bytes():
    """Generation-aware VMEM budget: ~3/4 of physical, clamped to safe range."""
    global _VMEM_LIMIT
    if _VMEM_LIMIT is None:
        limit = _MIN_VMEM
        try:
            info = pltpu.get_tpu_info()
            cap = getattr(info, "vmem_capacity_bytes", None)
            if cap:
                limit = min(max(int(cap) * 3 // 4, _MIN_VMEM), _MAX_VMEM)
        except Exception:
            pass
        _VMEM_LIMIT = limit
    return _VMEM_LIMIT


def _cparams(dims):
    return pltpu.CompilerParams(dimension_semantics=dims,
                                vmem_limit_bytes=_vmem_limit_bytes())


def _tile(dim, target):
    """Largest (8-aligned if possible) divisor of `dim` <= target.
    Falls back to the full dim, which is always a legal block extent."""
    if dim <= target:
        return dim
    for step in (512, 256, 128, 8):
        t = (target // step) * step
        while t >= step:
            if dim % t == 0:
                return t
            t -= step
    return dim


def _tile_lane(dim, target):
    """Like _tile but restricted to multiples of 128 (lane-dim blocks)."""
    if dim <= target:
        return dim
    t = (target // 128) * 128
    while t >= 128:
        if dim % t == 0:
            return t
        t -= 128
    return dim


# ----------------------------------------------------------------------------
# LayerNorm (residual-free) — used only for the embedding LN
# ----------------------------------------------------------------------------

def _ln_kernel(x_ref, g_ref, b_ref, o_ref, *, eps):
    x = x_ref[...].astype(jnp.float32)
    mean = jnp.mean(x, axis=-1, keepdims=True)
    var = jnp.mean(jnp.square(x - mean), axis=-1, keepdims=True)
    y = (x - mean) * jax.lax.rsqrt(var + eps)
    y = y * g_ref[...] + b_ref[...]
    o_ref[...] = y.astype(o_ref.dtype)


def layernorm(x, gamma, beta, eps=1e-5):
    M, H = x.shape
    tm = _tile(M, 1024)                         # pure bandwidth: big row tiles
    return pl.pallas_call(
        functools.partial(_ln_kernel, eps=eps),
        out_shape=jax.ShapeDtypeStruct((M, H), x.dtype),
        grid=(M // tm,),
        in_specs=[
            pl.BlockSpec((tm, H), lambda i: (i, 0)),
            pl.BlockSpec((1, H), lambda i: (0, 0)),
            pl.BlockSpec((1, H), lambda i: (0, 0)),
        ],
        out_specs=pl.BlockSpec((tm, H), lambda i: (i, 0)),
        compiler_params=_cparams(("parallel",)),
    )(x, gamma.reshape(1, H), beta.reshape(1, H))


# ----------------------------------------------------------------------------
# Fused QKV projection: one [M,K] @ [K,3H] full-K matmul, split into q/k/v
# in-kernel; the 1/sqrt(dh) softmax scale is folded into q here.
# ----------------------------------------------------------------------------

def _qkv_kernel(x_ref, w_ref, b_ref, q_ref, k_ref, v_ref, *, H, q_scale):
    acc = jnp.dot(x_ref[...], w_ref[...], preferred_element_type=jnp.float32)
    acc = acc + b_ref[...]
    q_ref[...] = (acc[:, :H] * q_scale).astype(q_ref.dtype)
    k_ref[...] = acc[:, H:2 * H].astype(k_ref.dtype)
    v_ref[...] = acc[:, 2 * H:].astype(v_ref.dtype)


def qkv_proj(x, w_qkv, b_qkv, q_scale):
    M, K = x.shape
    H3 = w_qkv.shape[1]
    H = H3 // 3
    tm = _tile(M, 512)
    out = jax.ShapeDtypeStruct((M, H), x.dtype)
    return pl.pallas_call(
        functools.partial(_qkv_kernel, H=H, q_scale=q_scale),
        out_shape=(out, out, out),
        grid=(M // tm,),
        in_specs=[
            pl.BlockSpec((tm, K), lambda i: (i, 0)),
            pl.BlockSpec((K, H3), lambda i: (0, 0)),
            pl.BlockSpec((1, H3), lambda i: (0, 0)),
        ],
        out_specs=(
            pl.BlockSpec((tm, H), lambda i: (i, 0)),
            pl.BlockSpec((tm, H), lambda i: (i, 0)),
            pl.BlockSpec((tm, H), lambda i: (i, 0)),
        ),
        compiler_params=_cparams(("parallel",)),
    )(x, w_qkv, b_qkv.reshape(1, H3))


# ----------------------------------------------------------------------------
# Flash-style attention: grid (B, nH, q-tile, kv-tile); q/k/v are laid out
# [B, nH, S, dh] so BlockSpec DMAs one (tq, dh)/(tk, dh) head slab per step.
# Online-softmax state lives in f32 VMEM scratch; kv axis is "arbitrary".
# q is pre-scaled by 1/sqrt(dh) (folded into the QKV projection).
# ----------------------------------------------------------------------------

def _flash_attn_kernel(q_ref, k_ref, v_ref, bias_ref, o_ref,
                       m_sc, l_sc, acc_sc):
    ki = pl.program_id(3)

    @pl.when(ki == 0)
    def _():
        m_sc[...] = jnp.full_like(m_sc, -1e30)
        l_sc[...] = jnp.zeros_like(l_sc)
        acc_sc[...] = jnp.zeros_like(acc_sc)

    q = q_ref[0, 0]                  # (tq, dh)  bf16, pre-scaled
    k = k_ref[0, 0]                  # (tk, dh)  bf16
    v = v_ref[0, 0]                  # (tk, dh)  bf16
    bias = bias_ref[0]               # (1, tk)   f32

    # s = q @ k^T (contract over dh), f32 accumulation on the MXU
    s = jax.lax.dot_general(q, k, (((1,), (1,)), ((), ())),
                            preferred_element_type=jnp.float32)      # (tq, tk)
    s = s + bias

    m_prev = m_sc[...]                                               # (tq, 1)
    m_new = jnp.maximum(m_prev, jnp.max(s, axis=-1, keepdims=True))
    alpha = jnp.exp(m_prev - m_new)
    p = jnp.exp(s - m_new)                                           # (tq, tk)
    l_sc[...] = alpha * l_sc[...] + jnp.sum(p, axis=-1, keepdims=True)
    acc_sc[...] = alpha * acc_sc[...] + jnp.dot(
        p.astype(v.dtype), v, preferred_element_type=jnp.float32)
    m_sc[...] = m_new

    @pl.when(ki == pl.num_programs(3) - 1)
    def _():
        inv = pl.reciprocal(l_sc[...], approx=True)                  # (tq, 1)
        o_ref[0, 0] = (acc_sc[...] * inv).astype(o_ref.dtype)


def attention(q, k, v, bias):
    """q/k/v: [B, nH, S, dh]; bias: [B, 1, S] additive mask."""
    B, nH, S, dh = q.shape
    tq = _tile(S, 256)
    tk = _tile_lane(S, 512)
    return pl.pallas_call(
        _flash_attn_kernel,
        out_shape=jax.ShapeDtypeStruct((B, nH, S, dh), q.dtype),
        grid=(B, nH, S // tq, S // tk),
        in_specs=[
            pl.BlockSpec((1, 1, tq, dh), lambda b, h, qi, ki: (b, h, qi, 0)),
            pl.BlockSpec((1, 1, tk, dh), lambda b, h, qi, ki: (b, h, ki, 0)),
            pl.BlockSpec((1, 1, tk, dh), lambda b, h, qi, ki: (b, h, ki, 0)),
            pl.BlockSpec((1, 1, tk), lambda b, h, qi, ki: (b, 0, ki)),
        ],
        out_specs=pl.BlockSpec((1, 1, tq, dh),
                               lambda b, h, qi, ki: (b, h, qi, 0)),
        scratch_shapes=[
            pltpu.VMEM((tq, 1), jnp.float32),     # m
            pltpu.VMEM((tq, 1), jnp.float32),     # l
            pltpu.VMEM((tq, dh), jnp.float32),    # acc
        ],
        compiler_params=_cparams(
            ("parallel", "parallel", "parallel", "arbitrary")),
    )(q, k, v, bias)


# ----------------------------------------------------------------------------
# Dense (full-K) + residual add + LayerNorm (attention out-projection epilogue)
# ----------------------------------------------------------------------------

def _dense_add_ln_kernel(x_ref, w_ref, b_ref, res_ref, g_ref, be_ref,
                         o_ref, *, eps):
    y = jnp.dot(x_ref[...], w_ref[...], preferred_element_type=jnp.float32)
    y = y + b_ref[...] + res_ref[...].astype(jnp.float32)
    mean = jnp.mean(y, axis=-1, keepdims=True)
    var = jnp.mean(jnp.square(y - mean), axis=-1, keepdims=True)
    y = (y - mean) * jax.lax.rsqrt(var + eps)
    y = y * g_ref[...] + be_ref[...]
    o_ref[...] = y.astype(o_ref.dtype)


def dense_add_layernorm(x, w, b, res, gamma, beta, eps=1e-5):
    M, K = x.shape
    _, N = w.shape
    tm = _tile(M, 512)
    return pl.pallas_call(
        functools.partial(_dense_add_ln_kernel, eps=eps),
        out_shape=jax.ShapeDtypeStruct((M, N), res.dtype),
        grid=(M // tm,),
        in_specs=[
            pl.BlockSpec((tm, K), lambda i: (i, 0)),
            pl.BlockSpec((K, N), lambda i: (0, 0)),
            pl.BlockSpec((1, N), lambda i: (0, 0)),
            pl.BlockSpec((tm, N), lambda i: (i, 0)),
            pl.BlockSpec((1, N), lambda i: (0, 0)),
            pl.BlockSpec((1, N), lambda i: (0, 0)),
        ],
        out_specs=pl.BlockSpec((tm, N), lambda i: (i, 0)),
        compiler_params=_cparams(("parallel",)),
    )(x, w, b.reshape(1, N), res, gamma.reshape(1, N), beta.reshape(1, N))


# ----------------------------------------------------------------------------
# Fused FFN: gelu(x @ w1[:, chunk] + b1[chunk]) @ w2[chunk, :] accumulated over
# intermediate-dim chunks into a (tm, H) f32 scratch, then +residual + LN.
# The intermediate activation never leaves VMEM; weight residency stays small.
# ----------------------------------------------------------------------------

def _ffn_kernel(x_ref, w1_ref, b1_ref, w2_ref, b2_ref, g_ref, be_ref,
                o_ref, acc_ref, *, eps):
    ki = pl.program_id(1)

    @pl.when(ki == 0)
    def _():
        acc_ref[...] = jnp.zeros_like(acc_ref)

    x = x_ref[...]                                                   # bf16
    h = jnp.dot(x, w1_ref[...], preferred_element_type=jnp.float32)
    h = h + b1_ref[...]
    h = 0.5 * h * (1.0 + jax.lax.erf(h * 0.7071067811865476))        # exact GELU
    acc_ref[...] += jnp.dot(h.astype(w2_ref.dtype), w2_ref[...],
                            preferred_element_type=jnp.float32)

    @pl.when(ki == pl.num_programs(1) - 1)
    def _():
        y = acc_ref[...] + b2_ref[...] + x.astype(jnp.float32)       # residual
        mean = jnp.mean(y, axis=-1, keepdims=True)
        var = jnp.mean(jnp.square(y - mean), axis=-1, keepdims=True)
        y = (y - mean) * jax.lax.rsqrt(var + eps)
        y = y * g_ref[...] + be_ref[...]
        o_ref[...] = y.astype(o_ref.dtype)


def ffn_add_layernorm(x, w1, b1, w2, b2, gamma, beta, eps=1e-5):
    M, H = x.shape
    I = w1.shape[1]
    tm = _tile(M, 512)
    ti = _tile_lane(I, 2048)
    return pl.pallas_call(
        functools.partial(_ffn_kernel, eps=eps),
        out_shape=jax.ShapeDtypeStruct((M, H), x.dtype),
        grid=(M // tm, I // ti),
        in_specs=[
            pl.BlockSpec((tm, H), lambda i, k: (i, 0)),
            pl.BlockSpec((H, ti), lambda i, k: (0, k)),
            pl.BlockSpec((1, ti), lambda i, k: (0, k)),
            pl.BlockSpec((ti, H), lambda i, k: (k, 0)),
            pl.BlockSpec((1, H), lambda i, k: (0, 0)),
            pl.BlockSpec((1, H), lambda i, k: (0, 0)),
            pl.BlockSpec((1, H), lambda i, k: (0, 0)),
        ],
        out_specs=pl.BlockSpec((tm, H), lambda i, k: (i, 0)),
        scratch_shapes=[pltpu.VMEM((tm, H), jnp.float32)],
        compiler_params=_cparams(("parallel", "arbitrary")),
    )(x, w1, b1.reshape(1, I), w2, b2.reshape(1, H),
      gamma.reshape(1, H), beta.reshape(1, H))


# ----------------------------------------------------------------------------
# Fused pooler (tanh dense on [CLS]) + classifier head (lane-padded to 128)
# ----------------------------------------------------------------------------

def _pool_cls_kernel(cls_ref, pw_ref, pb_ref, cw_ref, cb_ref, o_ref):
    pooled = jnp.dot(cls_ref[...], pw_ref[...],
                     preferred_element_type=jnp.float32)
    pooled = jnp.tanh(pooled + pb_ref[...])
    logits = jnp.dot(pooled.astype(cw_ref.dtype), cw_ref[...],
                     preferred_element_type=jnp.float32) + cb_ref[...]
    o_ref[...] = logits.astype(o_ref.dtype)


def pooler_classifier(cls, pw, pb, cw, cb):
    B, H = cls.shape
    NLP = cw.shape[1]
    return pl.pallas_call(
        _pool_cls_kernel,
        out_shape=jax.ShapeDtypeStruct((B, NLP), jnp.float32),
        grid=(1,),
        in_specs=[
            pl.BlockSpec((B, H), lambda i: (0, 0)),
            pl.BlockSpec((H, H), lambda i: (0, 0)),
            pl.BlockSpec((1, H), lambda i: (0, 0)),
            pl.BlockSpec((H, NLP), lambda i: (0, 0)),
            pl.BlockSpec((1, NLP), lambda i: (0, 0)),
        ],
        out_specs=pl.BlockSpec((B, NLP), lambda i: (0, 0)),
        compiler_params=_cparams(("arbitrary",)),
    )(cls, pw, pb.reshape(1, H), cw, cb.reshape(1, NLP))


# ----------------------------------------------------------------------------
# Model definition (small synthetic RoBERTa + classifier head)
# ----------------------------------------------------------------------------

CFG = dict(
    vocab_size=100,
    hidden=32,
    num_layers=2,
    num_heads=4,
    intermediate=64,
    max_pos=16 + 2,          # roberta uses padding_idx offset
    type_vocab=1,
    num_labels=23,
    num_labels_padded=128,   # lane-dense classifier output
    pad_id=1,
)


def init_params(key, cfg):
    H, I = cfg["hidden"], cfg["intermediate"]
    NLP = cfg["num_labels_padded"]

    def nrm(key, shape, scale=0.02):
        return (scale * jax.random.normal(key, shape)).astype(ACT_DTYPE)

    keys = iter(jax.random.split(key, 256))
    p = {
        "word_emb": (0.02 * jax.random.normal(next(keys), (cfg["vocab_size"], H))
                     ).astype(jnp.float32),
        "pos_emb": (0.02 * jax.random.normal(next(keys), (cfg["max_pos"], H))
                    ).astype(jnp.float32),
        "type_emb": (0.02 * jax.random.normal(next(keys), (cfg["type_vocab"], H))
                     ).astype(jnp.float32),
        "emb_ln_g": jnp.ones((H,), jnp.float32),
        "emb_ln_b": jnp.zeros((H,), jnp.float32),
        "layers": [],
        "pool_w": nrm(next(keys), (H, H)),
        "pool_b": jnp.zeros((H,), jnp.float32),
        # classifier weight lane-padded: only the first num_labels columns used
        "cls_w": jnp.zeros((H, NLP), ACT_DTYPE).at[:, :cfg["num_labels"]].set(
            nrm(next(keys), (H, cfg["num_labels"]))),
        "cls_b": jnp.zeros((NLP,), jnp.float32),
    }
    for _ in range(cfg["num_layers"]):
        p["layers"].append({
            "w_qkv": nrm(next(keys), (H, 3 * H)),
            "b_qkv": jnp.zeros((3 * H,), jnp.float32),
            "wo": nrm(next(keys), (H, H)),
            "bo": jnp.zeros((H,), jnp.float32),
            "ln1_g": jnp.ones((H,), jnp.float32),
            "ln1_b": jnp.zeros((H,), jnp.float32),
            "w_ff1": nrm(next(keys), (H, I)),
            "b_ff1": jnp.zeros((I,), jnp.float32),
            "w_ff2": nrm(next(keys), (I, H)),
            "b_ff2": jnp.zeros((H,), jnp.float32),
            "ln2_g": jnp.ones((H,), jnp.float32),
            "ln2_b": jnp.zeros((H,), jnp.float32),
        })
    return p


def roberta_classifier_forward(params, ids, mask, token_type_ids, cfg=CFG):
    B, S = ids.shape
    H = cfg["hidden"]
    nH = cfg["num_heads"]
    dh = H // nH
    q_scale = 1.0 / math.sqrt(dh)

    # ---- embeddings (gathers are plain-JAX glue; no clean Pallas equivalent) ----
    not_pad = (ids != cfg["pad_id"]).astype(jnp.int32)
    pos_ids = jnp.cumsum(not_pad, axis=1) * not_pad + cfg["pad_id"]
    emb = (params["word_emb"][ids]
           + params["pos_emb"][pos_ids]
           + params["type_emb"][token_type_ids])
    emb = emb.reshape(B * S, H).astype(ACT_DTYPE)
    h = layernorm(emb, params["emb_ln_g"], params["emb_ln_b"])        # [B*S, H]

    # additive attention-mask bias, [B, 1, S]
    bias = (1.0 - mask.astype(jnp.float32))[:, None, :] * -10000.0

    def split_heads(t):   # [B*S, H] -> [B, nH, S, dh] (XLA layout plumbing)
        return t.reshape(B, S, nH, dh).transpose(0, 2, 1, 3)

    # ---- encoder layers ----
    for lp in params["layers"]:
        x2 = h                                                        # [B*S, H]
        q, k, v = qkv_proj(x2, lp["w_qkv"], lp["b_qkv"], q_scale)     # [B*S, H]
        ctx = attention(split_heads(q), split_heads(k), split_heads(v), bias)
        ctx = ctx.transpose(0, 2, 1, 3).reshape(B * S, H)             # merge heads
        h1 = dense_add_layernorm(ctx, lp["wo"], lp["bo"], x2,
                                 lp["ln1_g"], lp["ln1_b"])
        h = ffn_add_layernorm(h1, lp["w_ff1"], lp["b_ff1"],
                              lp["w_ff2"], lp["b_ff2"],
                              lp["ln2_g"], lp["ln2_b"])

    # ---- pooler: tanh(W @ hidden[:, 0]) -> Dropout(0.3) -> classifier ----
    # TODO(synk): training-mode dropout (Bernoulli mask) is not applied here
    # (inference semantics: identity).
    cls = h.reshape(B, S, H)[:, 0, :]                                 # [B, H]
    logits = pooler_classifier(cls, params["pool_w"], params["pool_b"],
                               params["cls_w"], params["cls_b"])      # [B, 128]
    return logits[:, :cfg["num_labels"]]                              # [B, 23]


if __name__ == "__main__":
    key = jax.random.PRNGKey(0)
    pkey, ikey = jax.random.split(key)

    B, S = 2, 8
    params = init_params(pkey, CFG)

    ids = jax.random.randint(ikey, (B, S), 2, CFG["vocab_size"], dtype=jnp.int32)
    mask = jnp.ones((B, S), dtype=jnp.int32)
    mask = mask.at[:, -2:].set(0)                 # a couple of padded positions
    ids = jnp.where(mask == 1, ids, CFG["pad_id"])
    token_type_ids = jnp.zeros((B, S), dtype=jnp.int32)

    fwd = jax.jit(functools.partial(roberta_classifier_forward, cfg=CFG))
    logits = fwd(params, ids, mask, token_type_ids)
    logits = jax.block_until_ready(logits)
    assert logits.shape == (B, CFG["num_labels"])
    assert bool(jnp.all(jnp.isfinite(logits)))
    print("KERNEL_OK")
</pallas_src>

<mosaic_0001>
module attributes {stable_mosaic.version = 11 : i64} {
  func.func @_ln_kernel(%arg0: i32, %arg1: memref<16x32xbf16, #tpu.memory_space<vmem>>, %arg2: memref<1x32xf32, #tpu.memory_space<vmem>>, %arg3: memref<1x32xf32, #tpu.memory_space<vmem>>, %arg4: memref<16x32xbf16, #tpu.memory_space<vmem>>) attributes {dimension_semantics = [#tpu.dimension_semantics<parallel>], iteration_bounds = array<i64: 1>, scalar_prefetch = 0 : i64, scratch_operands = 0 : i64, tpu.core_type = #tpu.core_type<tc>, window_params = [{transform_indices = @transform_0, window_bounds = array<i64: 16, 32>}, {pipeline_mode = #tpu.pipeline_mode<synchronous>, transform_indices = @transform_1, window_bounds = array<i64: 1, 32>}, {pipeline_mode = #tpu.pipeline_mode<synchronous>, transform_indices = @transform_2, window_bounds = array<i64: 1, 32>}, {transform_indices = @transform_3, window_bounds = array<i64: 16, 32>}]} {
    %c0 = arith.constant 0 : index
    %c0_0 = arith.constant 0 : index
    %0 = vector.load %arg1[%c0, %c0_0] : memref<16x32xbf16, #tpu.memory_space<vmem>>, vector<16x32xbf16>
    %1 = arith.extf %0 : vector<16x32xbf16> to vector<16x32xf32>
    %cst = arith.constant dense<0.000000e+00> : vector<16xf32>
    %2 = vector.multi_reduction <add>, %1, %cst [1] : vector<16x32xf32> to vector<16xf32>
    %3 = vector.shape_cast %2 : vector<16xf32> to vector<16x1xf32>
    %cst_1 = arith.constant 3.200000e+01 : f32
    %4 = vector.broadcast %cst_1 : f32 to vector<16x1xf32>
    %5 = arith.divf %3, %4 : vector<16x1xf32>
    %6 = vector.broadcast %5 : vector<16x1xf32> to vector<16x32xf32>
    %7 = arith.subf %1, %6 : vector<16x32xf32>
    %8 = arith.mulf %7, %7 : vector<16x32xf32>
    %cst_2 = arith.constant dense<0.000000e+00> : vector<16xf32>
    %9 = vector.multi_reduction <add>, %8, %cst_2 [1] : vector<16x32xf32> to vector<16xf32>
    %10 = vector.shape_cast %9 : vector<16xf32> to vector<16x1xf32>
    %cst_3 = arith.constant 3.200000e+01 : f32
    %11 = vector.broadcast %cst_3 : f32 to vector<16x1xf32>
    %12 = arith.divf %10, %11 : vector<16x1xf32>
    %13 = vector.broadcast %5 : vector<16x1xf32> to vector<16x32xf32>
    %14 = arith.subf %1, %13 : vector<16x32xf32>
    %cst_4 = arith.constant 9.99999974E-6 : f32
    %15 = vector.broadcast %cst_4 : f32 to vector<16x1xf32>
    %16 = arith.addf %12, %15 : vector<16x1xf32>
    %17 = math.rsqrt %16 : vector<16x1xf32>
    %18 = vector.broadcast %17 : vector<16x1xf32> to vector<16x32xf32>
    %19 = arith.mulf %14, %18 : vector<16x32xf32>
    %c0_5 = arith.constant 0 : index
    %c0_6 = arith.constant 0 : index
    %20 = vector.load %arg2[%c0_5, %c0_6] : memref<1x32xf32, #tpu.memory_space<vmem>>, vector<1x32xf32>
    %21 = vector.broadcast %20 : vector<1x32xf32> to vector<16x32xf32>
    %22 = arith.mulf %19, %21 : vector<16x32xf32>
    %c0_7 = arith.constant 0 : index
    %c0_8 = arith.constant 0 : index
    %23 = vector.load %arg3[%c0_7, %c0_8] : memref<1x32xf32, #tpu.memory_space<vmem>>, vector<1x32xf32>
    %24 = vector.broadcast %23 : vector<1x32xf32> to vector<16x32xf32>
    %25 = arith.addf %22, %24 : vector<16x32xf32>
    %26 = arith.truncf %25 : vector<16x32xf32> to vector<16x32xbf16>
    %c0_9 = arith.constant 0 : index
    %c0_10 = arith.constant 0 : index
    %27 = vector.load %arg4[%c0_9, %c0_10] : memref<16x32xbf16, #tpu.memory_space<vmem>>, vector<16x32xbf16>
    tpu.vector_store %arg4[%c0_9, %c0_10], %26 {strides = array<i32>} : memref<16x32xbf16, #tpu.memory_space<vmem>>, vector<16x32xbf16>,
    return
  }
  func.func @transform_0(%arg0: i32) -> (i32, i32) {
    %c0_i32 = arith.constant 0 : i32
    %c0_i32_0 = arith.constant 0 : i32
    return %arg0, %c0_i32 : i32, i32
  }
  func.func @transform_1(%arg0: i32) -> (i32, i32) {
    %c0_i32 = arith.constant 0 : i32
    %c0_i32_0 = arith.constant 0 : i32
    %c0_i32_1 = arith.constant 0 : i32
    return %c0_i32, %c0_i32_0 : i32, i32
  }
  func.func @transform_2(%arg0: i32) -> (i32, i32) {
    %c0_i32 = arith.constant 0 : i32
    %c0_i32_0 = arith.constant 0 : i32
    %c0_i32_1 = arith.constant 0 : i32
    return %c0_i32, %c0_i32_0 : i32, i32
  }
  func.func @transform_3(%arg0: i32) -> (i32, i32) {
    %c0_i32 = arith.constant 0 : i32
    %c0_i32_0 = arith.constant 0 : i32
    return %arg0, %c0_i32 : i32, i32
  }
}

module attributes {stable_mosaic.version = 11 : i64} {
  func.func @_qkv_kernel(%arg0: i32, %arg1: memref<16x32xbf16, #tpu.memory_space<vmem>>, %arg2: memref<32x96xbf16, #tpu.memory_space<vmem>>, %arg3: memref<1x96xf32, #tpu.memory_space<vmem>>, %arg4: memref<16x32xbf16, #tpu.memory_space<vmem>>, %arg5: memref<16x32xbf16, #tpu.memory_space<vmem>>, %arg6: memref<16x32xbf16, #tpu.memory_space<vmem>>) attributes {dimension_semantics = [#tpu.dimension_semantics<parallel>], iteration_bounds = array<i64: 1>, scalar_prefetch = 0 : i64, scratch_operands = 0 : i64, tpu.core_type = #tpu.core_type<tc>, window_params = [{transform_indices = @transform_0, window_bounds = array<i64: 16, 32>}, {pipeline_mode = #tpu.pipeline_mode<synchronous>, transform_indices = @transform_1, window_bounds = array<i64: 32, 96>}, {pipeline_mode = #tpu.pipeline_mode<synchronous>, transform_indices = @transform_2, window_bounds = array<i64: 1, 96>}, {transform_indices = @transform_3, window_bounds = array<i64: 16, 32>}, {transform_indices = @transform_4, window_bounds = array<i64: 16, 32>}, {transform_indices = @transform_5, window_bounds = array<i64: 16, 32>}]} {
    %c0 = arith.constant 0 : index
    %c0_0 = arith.constant 0 : index
    %0 = vector.load %arg1[%c0, %c0_0] : memref<16x32xbf16, #tpu.memory_space<vmem>>, vector<16x32xbf16>
    %c0_1 = arith.constant 0 : index
    %c0_2 = arith.constant 0 : index
    %1 = vector.load %arg2[%c0_1, %c0_2] : memref<32x96xbf16, #tpu.memory_space<vmem>>, vector<32x96xbf16>
    %cst = arith.constant dense<0.000000e+00> : vector<16x96xf32>
    %2 = tpu.matmul %0, %1, %cst {dimension_numbers = #tpu.dot_dimension_numbers<[1], [0], [0], [1], [0, 0, 1, 1], [], []>} : vector<16x32xbf16>, vector<32x96xbf16>, vector<16x96xf32> -> vector<16x96xf32>
    %c0_3 = arith.constant 0 : index
    %c0_4 = arith.constant 0 : index
    %3 = vector.load %arg3[%c0_3, %c0_4] : memref<1x96xf32, #tpu.memory_space<vmem>>, vector<1x96xf32>
    %4 = vector.broadcast %3 : vector<1x96xf32> to vector<16x96xf32>
    %5 = arith.addf %2, %4 : vector<16x96xf32>
    %6 = vector.extract_strided_slice %5 {offsets = [0, 0], sizes = [16, 32], strides = [1, 1]} : vector<16x96xf32> to vector<16x32xf32>
    %cst_5 = arith.constant 0.353553385 : f32
    %7 = vector.broadcast %cst_5 : f32 to vector<16x32xf32>
    %8 = arith.mulf %6, %7 : vector<16x32xf32>
    %9 = arith.truncf %8 : vector<16x32xf32> to vector<16x32xbf16>
    %c0_6 = arith.constant 0 : index
    %c0_7 = arith.constant 0 : index
    %10 = vector.load %arg4[%c0_6, %c0_7] : memref<16x32xbf16, #tpu.memory_space<vmem>>, vector<16x32xbf16>
    tpu.vector_store %arg4[%c0_6, %c0_7], %9 {strides = array<i32>} : memref<16x32xbf16, #tpu.memory_space<vmem>>, vector<16x32xbf16>,
    %11 = vector.extract_strided_slice %5 {offsets = [0, 32], sizes = [16, 32], strides = [1, 1]} : vector<16x96xf32> to vector<16x32xf32>
    %12 = arith.truncf %11 : vector<16x32xf32> to vector<16x32xbf16>
    %c0_8 = arith.constant 0 : index
    %c0_9 = arith.constant 0 : index
    %13 = vector.load %arg5[%c0_8, %c0_9] : memref<16x32xbf16, #tpu.memory_space<vmem>>, vector<16x32xbf16>
    tpu.vector_store %arg5[%c0_8, %c0_9], %12 {strides = array<i32>} : memref<16x32xbf16, #tpu.memory_space<vmem>>, vector<16x32xbf16>,
    %14 = vector.extract_strided_slice %5 {offsets = [0, 64], sizes = [16, 32], strides = [1, 1]} : vector<16x96xf32> to vector<16x32xf32>
    %15 = arith.truncf %14 : vector<16x32xf32> to vector<16x32xbf16>
    %c0_10 = arith.constant 0 : index
    %c0_11 = arith.constant 0 : index
    %16 = vector.load %arg6[%c0_10, %c0_11] : memref<16x32xbf16, #tpu.memory_space<vmem>>, vector<16x32xbf16>
    tpu.vector_store %arg6[%c0_10, %c0_11], %15 {strides = array<i32>} : memref<16x32xbf16, #tpu.memory_space<vmem>>, vector<16x32xbf16>,
    return
  }
  func.func @transform_0(%arg0: i32) -> (i32, i32) {
    %c0_i32 = arith.constant 0 : i32
    %c0_i32_0 = arith.constant 0 : i32
    return %arg0, %c0_i32 : i32, i32
  }
  func.func @transform_1(%arg0: i32) -> (i32, i32) {
    %c0_i32 = arith.constant 0 : i32
    %c0_i32_0 = arith.constant 0 : i32
    %c0_i32_1 = arith.constant 0 : i32
    return %c0_i32, %c0_i32_0 : i32, i32
  }
  func.func @transform_2(%arg0: i32) -> (i32, i32) {
    %c0_i32 = arith.constant 0 : i32
    %c0_i32_0 = arith.constant 0 : i32
    %c0_i32_1 = arith.constant 0 : i32
    return %c0_i32, %c0_i32_0 : i32, i32
  }
  func.func @transform_3(%arg0: i32) -> (i32, i32) {
    %c0_i32 = arith.constant 0 : i32
    %c0_i32_0 = arith.constant 0 : i32
    return %arg0, %c0_i32 : i32, i32
  }
  func.func @transform_4(%arg0: i32) -> (i32, i32) {
    %c0_i32 = arith.constant 0 : i32
    %c0_i32_0 = arith.constant 0 : i32
    return %arg0, %c0_i32 : i32, i32
  }
  func.func @transform_5(%arg0: i32) -> (i32, i32) {
    %c0_i32 = arith.constant 0 : i32
    %c0_i32_0 = arith.constant 0 : i32
    return %arg0, %c0_i32 : i32, i32
  }
}

module attributes {stable_mosaic.version = 11 : i64} {
  func.func @_flash_attn_kernel(%arg0: i32, %arg1: i32, %arg2: i32, %arg3: i32, %arg4: memref<1x1x8x8xbf16, #tpu.memory_space<vmem>>, %arg5: memref<1x1x8x8xbf16, #tpu.memory_space<vmem>>, %arg6: memref<1x1x8x8xbf16, #tpu.memory_space<vmem>>, %arg7: memref<1x1x8xf32, #tpu.memory_space<vmem>>, %arg8: memref<1x1x8x8xbf16, #tpu.memory_space<vmem>>, %arg9: memref<8x1xf32, #tpu.memory_space<vmem>>, %arg10: memref<8x1xf32, #tpu.memory_space<vmem>>, %arg11: memref<8x8xf32, #tpu.memory_space<vmem>>) attributes {dimension_semantics = [#tpu.dimension_semantics<parallel>, #tpu.dimension_semantics<parallel>, #tpu.dimension_semantics<parallel>, #tpu.dimension_semantics<arbitrary>], iteration_bounds = array<i64: 2, 4, 1, 1>, scalar_prefetch = 0 : i64, scratch_operands = 3 : i64, tpu.core_type = #tpu.core_type<tc>, window_params = [{transform_indices = @transform_0, window_bounds = array<i64: 1, 1, 8, 8>}, {transform_indices = @transform_1, window_bounds = array<i64: 1, 1, 8, 8>}, {transform_indices = @transform_2, window_bounds = array<i64: 1, 1, 8, 8>}, {transform_indices = @transform_3, window_bounds = array<i64: 1, 1, 8>}, {transform_indices = @transform_4, window_bounds = array<i64: 1, 1, 8, 8>}]} {
    %c0_i32 = arith.constant 0 : i32
    %0 = arith.cmpi eq, %arg3, %c0_i32 : i32
    %1 = arith.extui %0 : i1 to i32
    %c0_i32_0 = arith.constant 0 : i32
    %2 = arith.cmpi ne, %1, %c0_i32_0 : i32
    scf.if %2 {
      %cst_32 = arith.constant -1.000000e+30 : f32
      %40 = vector.broadcast %cst_32 : f32 to vector<8x1xf32>
      %c0_33 = arith.constant 0 : index
      %c0_34 = arith.constant 0 : index
      %41 = vector.load %arg9[%c0_33, %c0_34] : memref<8x1xf32, #tpu.memory_space<vmem>>, vector<8x1xf32>
      tpu.vector_store %arg9[%c0_33, %c0_34], %40 {strides = array<i32>} : memref<8x1xf32, #tpu.memory_space<vmem>>, vector<8x1xf32>,
      %cst_35 = arith.constant 0.000000e+00 : f32
      %42 = vector.broadcast %cst_35 : f32 to vector<8x1xf32>
      %c0_36 = arith.constant 0 : index
      %c0_37 = arith.constant 0 : index
      %43 = vector.load %arg10[%c0_36, %c0_37] : memref<8x1xf32, #tpu.memory_space<vmem>>, vector<8x1xf32>
      tpu.vector_store %arg10[%c0_36, %c0_37], %42 {strides = array<i32>} : memref<8x1xf32, #tpu.memory_space<vmem>>, vector<8x1xf32>,
      %cst_38 = arith.constant 0.000000e+00 : f32
      %44 = vector.broadcast %cst_38 : f32 to vector<8x8xf32>
      %c0_39 = arith.constant 0 : index
      %c0_40 = arith.constant 0 : index
      %45 = vector.load %arg11[%c0_39, %c0_40] : memref<8x8xf32, #tpu.memory_space<vmem>>, vector<8x8xf32>
      tpu.vector_store %arg11[%c0_39, %c0_40], %44 {strides = array<i32>} : memref<8x8xf32, #tpu.memory_space<vmem>>, vector<8x8xf32>,
    } else {
    }
    %c0 = arith.constant 0 : index
    %c0_1 = arith.constant 0 : index
    %c0_2 = arith.constant 0 : index
    %c0_3 = arith.constant 0 : index
    %3 = vector.load %arg4[%c0, %c0_1, %c0_2, %c0_3] : memref<1x1x8x8xbf16, #tpu.memory_space<vmem>>, vector<1x1x8x8xbf16>
    %4 = vector.shape_cast %3 : vector<1x1x8x8xbf16> to vector<8x8xbf16>
    %c0_4 = arith.constant 0 : index
    %c0_5 = arith.constant 0 : index
    %c0_6 = arith.constant 0 : index
    %c0_7 = arith.constant 0 : index
    %5 = vector.load %arg5[%c0_4, %c0_5, %c0_6, %c0_7] : memref<1x1x8x8xbf16, #tpu.memory_space<vmem>>, vector<1x1x8x8xbf16>
    %6 = vector.shape_cast %5 : vector<1x1x8x8xbf16> to vector<8x8xbf16>
    %c0_8 = arith.constant 0 : index
    %c0_9 = arith.constant 0 : index
    %c0_10 = arith.constant 0 : index
    %c0_11 = arith.constant 0 : index
    %7 = vector.load %arg6[%c0_8, %c0_9, %c0_10, %c0_11] : memref<1x1x8x8xbf16, #tpu.memory_space<vmem>>, vector<1x1x8x8xbf16>
    %8 = vector.shape_cast %7 : vector<1x1x8x8xbf16> to vector<8x8xbf16>
    %c0_12 = arith.constant 0 : index
    %c0_13 = arith.constant 0 : index
    %c0_14 = arith.constant 0 : index
    %9 = vector.load %arg7[%c0_12, %c0_13, %c0_14] : memref<1x1x8xf32, #tpu.memory_space<vmem>>, vector<1x1x8xf32>
    %10 = vector.shape_cast %9 : vector<1x1x8xf32> to vector<1x8xf32>
    %cst = arith.constant dense<0.000000e+00> : vector<8x8xf32>
    %11 = tpu.matmul %4, %6, %cst {dimension_numbers = #tpu.dot_dimension_numbers<[1], [1], [0], [0], [0, 0, 1, 0], [], []>} : vector<8x8xbf16>, vector<8x8xbf16>, vector<8x8xf32> -> vector<8x8xf32>
    %12 = vector.broadcast %10 : vector<1x8xf32> to vector<8x8xf32>
    %13 = arith.addf %11, %12 : vector<8x8xf32>
    %c0_15 = arith.constant 0 : index
    %c0_16 = arith.constant 0 : index
    %14 = vector.load %arg9[%c0_15, %c0_16] : memref<8x1xf32, #tpu.memory_space<vmem>>, vector<8x1xf32>
    %cst_17 = arith.constant dense<0xFF800000> : vector<8xf32>
    %15 = vector.multi_reduction <maximumf>, %13, %cst_17 [1] : vector<8x8xf32> to vector<8xf32>
    %16 = vector.shape_cast %15 : vector<8xf32> to vector<8x1xf32>
    %17 = arith.maximumf %14, %16 : vector<8x1xf32>
    %18 = arith.subf %14, %17 : vector<8x1xf32>
    %19 = math.exp %18 : vector<8x1xf32>
    %20 = vector.broadcast %17 : vector<8x1xf32> to vector<8x8xf32>
    %21 = arith.subf %13, %20 : vector<8x8xf32>
    %22 = math.exp %21 : vector<8x8xf32>
    %c0_18 = arith.constant 0 : index
    %c0_19 = arith.constant 0 : index
    %23 = vector.load %arg10[%c0_18, %c0_19] : memref<8x1xf32, #tpu.memory_space<vmem>>, vector<8x1xf32>
    %24 = arith.mulf %19, %23 : vector<8x1xf32>
    %cst_20 = arith.constant dense<0.000000e+00> : vector<8xf32>
    %25 = vector.multi_reduction <add>, %22, %cst_20 [1] : vector<8x8xf32> to vector<8xf32>
    %26 = vector.shape_cast %25 : vector<8xf32> to vector<8x1xf32>
    %27 = arith.addf %24, %26 : vector<8x1xf32>
    %c0_21 = arith.constant 0 : index
    %c0_22 = arith.constant 0 : index
    %28 = vector.load %arg10[%c0_21, %c0_22] : memref<8x1xf32, #tpu.memory_space<vmem>>, vector<8x1xf32>
    tpu.vector_store %arg10[%c0_21, %c0_22], %27 {strides = array<i32>} : memref<8x1xf32, #tpu.memory_space<vmem>>, vector<8x1xf32>,
    %c0_23 = arith.constant 0 : index
    %c0_24 = arith.constant 0 : index
    %29 = vector.load %arg11[%c0_23, %c0_24] : memref<8x8xf32, #tpu.memory_space<vmem>>, vector<8x8xf32>
    %30 = vector.broadcast %19 : vector<8x1xf32> to vector<8x8xf32>
    %31 = arith.mulf %30, %29 : vector<8x8xf32>
    %32 = arith.truncf %22 : vector<8x8xf32> to vector<8x8xbf16>
    %cst_25 = arith.constant dense<0.000000e+00> : vector<8x8xf32>
    %33 = tpu.matmul %32, %8, %cst_25 {dimension_numbers = #tpu.dot_dimension_numbers<[1], [0], [0], [1], [0, 0, 1, 1], [], []>} : vector<8x8xbf16>, vector<8x8xbf16>, vector<8x8xf32> -> vector<8x8xf32>
    %34 = arith.addf %31, %33 : vector<8x8xf32>
    %c0_26 = arith.constant 0 : index
    %c0_27 = arith.constant 0 : index
    %35 = vector.load %arg11[%c0_26, %c0_27] : memref<8x8xf32, #tpu.memory_space<vmem>>, vector<8x8xf32>
    tpu.vector_store %arg11[%c0_26, %c0_27], %34 {strides = array<i32>} : memref<8x8xf32, #tpu.memory_space<vmem>>, vector<8x8xf32>,
    %c0_28 = arith.constant 0 : index
    %c0_29 = arith.constant 0 : index
    %36 = vector.load %arg9[%c0_28, %c0_29] : memref<8x1xf32, #tpu.memory_space<vmem>>, vector<8x1xf32>
    tpu.vector_store %arg9[%c0_28, %c0_29], %17 {strides = array<i32>} : memref<8x1xf32, #tpu.memory_space<vmem>>, vector<8x1xf32>,
    %c0_i32_30 = arith.constant 0 : i32
    %37 = arith.cmpi eq, %arg3, %c0_i32_30 : i32
    %38 = arith.extui %37 : i1 to i32
    %c0_i32_31 = arith.constant 0 : i32
    %39 = arith.cmpi ne, %38, %c0_i32_31 : i32
    scf.if %39 {
      %c0_32 = arith.constant 0 : index
      %c0_33 = arith.constant 0 : index
      %40 = vector.load %arg10[%c0_32, %c0_33] : memref<8x1xf32, #tpu.memory_space<vmem>>, vector<8x1xf32>
      %41 = tpu.reciprocal %40 {approx = true} : vector<8x1xf32> -> vector<8x1xf32>
      %c0_34 = arith.constant 0 : index
      %c0_35 = arith.constant 0 : index
      %42 = vector.load %arg11[%c0_34, %c0_35] : memref<8x8xf32, #tpu.memory_space<vmem>>, vector<8x8xf32>
      %43 = vector.broadcast %41 : vector<8x1xf32> to vector<8x8xf32>
      %44 = arith.mulf %42, %43 : vector<8x8xf32>
      %45 = arith.truncf %44 : vector<8x8xf32> to vector<8x8xbf16>
      %c0_36 = arith.constant 0 : index
      %c0_37 = arith.constant 0 : index
      %c0_38 = arith.constant 0 : index
      %c0_39 = arith.constant 0 : index
      %46 = vector.load %arg8[%c0_36, %c0_37, %c0_38, %c0_39] : memref<1x1x8x8xbf16, #tpu.memory_space<vmem>>, vector<1x1x8x8xbf16>
      %47 = vector.shape_cast %46 : vector<1x1x8x8xbf16> to vector<8x8xbf16>
      %48 = vector.shape_cast %45 : vector<8x8xbf16> to vector<1x1x8x8xbf16>
      tpu.vector_store %arg8[%c0_36, %c0_37, %c0_38, %c0_39], %48 {strides = array<i32>} : memref<1x1x8x8xbf16, #tpu.memory_space<vmem>>, vector<1x1x8x8xbf16>,
    } else {
    }
    return
  }
  func.func @transform_0(%arg0: i32, %arg1: i32, %arg2: i32, %arg3: i32) -> (i32, i32, i32, i32) {
    %c0_i32 = arith.constant 0 : i32
    %c0_i32_0 = arith.constant 0 : i32
    return %arg0, %arg1, %arg2, %c0_i32 : i32, i32, i32, i32
  }
  func.func @transform_1(%arg0: i32, %arg1: i32, %arg2: i32, %arg3: i32) -> (i32, i32, i32, i32) {
    %c0_i32 = arith.constant 0 : i32
    %c0_i32_0 = arith.constant 0 : i32
    return %arg0, %arg1, %arg3, %c0_i32 : i32, i32, i32, i32
  }
  func.func @transform_2(%arg0: i32, %arg1: i32, %arg2: i32, %arg3: i32) -> (i32, i32, i32, i32) {
    %c0_i32 = arith.constant 0 : i32
    %c0_i32_0 = arith.constant 0 : i32
    return %arg0, %arg1, %arg3, %c0_i32 : i32, i32, i32, i32
  }
  func.func @transform_3(%arg0: i32, %arg1: i32, %arg2: i32, %arg3: i32) -> (i32, i32, i32) {
    %c0_i32 = arith.constant 0 : i32
    %c0_i32_0 = arith.constant 0 : i32
    return %arg0, %c0_i32, %arg3 : i32, i32, i32
  }
  func.func @transform_4(%arg0: i32, %arg1: i32, %arg2: i32, %arg3: i32) -> (i32, i32, i32, i32) {
    %c0_i32 = arith.constant 0 : i32
    %c0_i32_0 = arith.constant 0 : i32
    return %arg0, %arg1, %arg2, %c0_i32 : i32, i32, i32, i32
  }
}

module attributes {stable_mosaic.version = 11 : i64} {
  func.func @_dense_add_ln_kernel(%arg0: i32, %arg1: memref<16x32xbf16, #tpu.memory_space<vmem>>, %arg2: memref<32x32xbf16, #tpu.memory_space<vmem>>, %arg3: memref<1x32xf32, #tpu.memory_space<vmem>>, %arg4: memref<16x32xbf16, #tpu.memory_space<vmem>>, %arg5: memref<1x32xf32, #tpu.memory_space<vmem>>, %arg6: memref<1x32xf32, #tpu.memory_space<vmem>>, %arg7: memref<16x32xbf16, #tpu.memory_space<vmem>>) attributes {dimension_semantics = [#tpu.dimension_semantics<parallel>], iteration_bounds = array<i64: 1>, scalar_prefetch = 0 : i64, scratch_operands = 0 : i64, tpu.core_type = #tpu.core_type<tc>, window_params = [{transform_indices = @transform_0, window_bounds = array<i64: 16, 32>}, {pipeline_mode = #tpu.pipeline_mode<synchronous>, transform_indices = @transform_1, window_bounds = array<i64: 32, 32>}, {pipeline_mode = #tpu.pipeline_mode<synchronous>, transform_indices = @transform_2, window_bounds = array<i64: 1, 32>}, {transform_indices = @transform_3, window_bounds = array<i64: 16, 32>}, {pipeline_mode = #tpu.pipeline_mode<synchronous>, transform_indices = @transform_4, window_bounds = array<i64: 1, 32>}, {pipeline_mode = #tpu.pipeline_mode<synchronous>, transform_indices = @transform_5, window_bounds = array<i64: 1, 32>}, {transform_indices = @transform_6, window_bounds = array<i64: 16, 32>}]} {
    %c0 = arith.constant 0 : index
    %c0_0 = arith.constant 0 : index
    %0 = vector.load %arg1[%c0, %c0_0] : memref<16x32xbf16, #tpu.memory_space<vmem>>, vector<16x32xbf16>
    %c0_1 = arith.constant 0 : index
    %c0_2 = arith.constant 0 : index
    %1 = vector.load %arg2[%c0_1, %c0_2] : memref<32x32xbf16, #tpu.memory_space<vmem>>, vector<32x32xbf16>
    %cst = arith.constant dense<0.000000e+00> : vector<16x32xf32>
    %2 = tpu.matmul %0, %1, %cst {dimension_numbers = #tpu.dot_dimension_numbers<[1], [0], [0], [1], [0, 0, 1, 1], [], []>} : vector<16x32xbf16>, vector<32x32xbf16>, vector<16x32xf32> -> vector<16x32xf32>
    %c0_3 = arith.constant 0 : index
    %c0_4 = arith.constant 0 : index
    %3 = vector.load %arg3[%c0_3, %c0_4] : memref<1x32xf32, #tpu.memory_space<vmem>>, vector<1x32xf32>
    %4 = vector.broadcast %3 : vector<1x32xf32> to vector<16x32xf32>
    %5 = arith.addf %2, %4 : vector<16x32xf32>
    %c0_5 = arith.constant 0 : index
    %c0_6 = arith.constant 0 : index
    %6 = vector.load %arg4[%c0_5, %c0_6] : memref<16x32xbf16, #tpu.memory_space<vmem>>, vector<16x32xbf16>
    %7 = arith.extf %6 : vector<16x32xbf16> to vector<16x32xf32>
    %8 = arith.addf %5, %7 : vector<16x32xf32>
    %cst_7 = arith.constant dense<0.000000e+00> : vector<16xf32>
    %9 = vector.multi_reduction <add>, %8, %cst_7 [1] : vector<16x32xf32> to vector<16xf32>
    %10 = vector.shape_cast %9 : vector<16xf32> to vector<16x1xf32>
    %cst_8 = arith.constant 3.200000e+01 : f32
    %11 = vector.broadcast %cst_8 : f32 to vector<16x1xf32>
    %12 = arith.divf %10, %11 : vector<16x1xf32>
    %13 = vector.broadcast %12 : vector<16x1xf32> to vector<16x32xf32>
    %14 = arith.subf %8, %13 : vector<16x32xf32>
    %15 = arith.mulf %14, %14 : vector<16x32xf32>
    %cst_9 = arith.constant dense<0.000000e+00> : vector<16xf32>
    %16 = vector.multi_reduction <add>, %15, %cst_9 [1] : vector<16x32xf32> to vector<16xf32>
    %17 = vector.shape_cast %16 : vector<16xf32> to vector<16x1xf32>
    %cst_10 = arith.constant 3.200000e+01 : f32
    %18 = vector.broadcast %cst_10 : f32 to vector<16x1xf32>
    %19 = arith.divf %17, %18 : vector<16x1xf32>
    %20 = vector.broadcast %12 : vector<16x1xf32> to vector<16x32xf32>
    %21 = arith.subf %8, %20 : vector<16x32xf32>
    %cst_11 = arith.constant 9.99999974E-6 : f32
    %22 = vector.broadcast %cst_11 : f32 to vector<16x1xf32>
    %23 = arith.addf %19, %22 : vector<16x1xf32>
    %24 = math.rsqrt %23 : vector<16x1xf32>
    %25 = vector.broadcast %24 : vector<16x1xf32> to vector<16x32xf32>
    %26 = arith.mulf %21, %25 : vector<16x32xf32>
    %c0_12 = arith.constant 0 : index
    %c0_13 = arith.constant 0 : index
    %27 = vector.load %arg5[%c0_12, %c0_13] : memref<1x32xf32, #tpu.memory_space<vmem>>, vector<1x32xf32>
    %28 = vector.broadcast %27 : vector<1x32xf32> to vector<16x32xf32>
    %29 = arith.mulf %26, %28 : vector<16x32xf32>
    %c0_14 = arith.constant 0 : index
    %c0_15 = arith.constant 0 : index
    %30 = vector.load %arg6[%c0_14, %c0_15] : memref<1x32xf32, #tpu.memory_space<vmem>>, vector<1x32xf32>
    %31 = vector.broadcast %30 : vector<1x32xf32> to vector<16x32xf32>
    %32 = arith.addf %29, %31 : vector<16x32xf32>
    %33 = arith.truncf %32 : vector<16x32xf32> to vector<16x32xbf16>
    %c0_16 = arith.constant 0 : index
    %c0_17 = arith.constant 0 : index
    %34 = vector.load %arg7[%c0_16, %c0_17] : memref<16x32xbf16, #tpu.memory_space<vmem>>, vector<16x32xbf16>
    tpu.vector_store %arg7[%c0_16, %c0_17], %33 {strides = array<i32>} : memref<16x32xbf16, #tpu.memory_space<vmem>>, vector<16x32xbf16>,
    return
  }
  func.func @transform_0(%arg0: i32) -> (i32, i32) {
    %c0_i32 = arith.constant 0 : i32
    %c0_i32_0 = arith.constant 0 : i32
    return %arg0, %c0_i32 : i32, i32
  }
  func.func @transform_1(%arg0: i32) -> (i32, i32) {
    %c0_i32 = arith.constant 0 : i32
    %c0_i32_0 = arith.constant 0 : i32
    %c0_i32_1 = arith.constant 0 : i32
    return %c0_i32, %c0_i32_0 : i32, i32
  }
  func.func @transform_2(%arg0: i32) -> (i32, i32) {
    %c0_i32 = arith.constant 0 : i32
    %c0_i32_0 = arith.constant 0 : i32
    %c0_i32_1 = arith.constant 0 : i32
    return %c0_i32, %c0_i32_0 : i32, i32
  }
  func.func @transform_3(%arg0: i32) -> (i32, i32) {
    %c0_i32 = arith.constant 0 : i32
    %c0_i32_0 = arith.constant 0 : i32
    return %arg0, %c0_i32 : i32, i32
  }
  func.func @transform_4(%arg0: i32) -> (i32, i32) {
    %c0_i32 = arith.constant 0 : i32
    %c0_i32_0 = arith.constant 0 : i32
    %c0_i32_1 = arith.constant 0 : i32
    return %c0_i32, %c0_i32_0 : i32, i32
  }
  func.func @transform_5(%arg0: i32) -> (i32, i32) {
    %c0_i32 = arith.constant 0 : i32
    %c0_i32_0 = arith.constant 0 : i32
    %c0_i32_1 = arith.constant 0 : i32
    return %c0_i32, %c0_i32_0 : i32, i32
  }
  func.func @transform_6(%arg0: i32) -> (i32, i32) {
    %c0_i32 = arith.constant 0 : i32
    %c0_i32_0 = arith.constant 0 : i32
    return %arg0, %c0_i32 : i32, i32
  }
}

module attributes {stable_mosaic.version = 11 : i64} {
  func.func @_ffn_kernel(%arg0: i32, %arg1: i32, %arg2: memref<16x32xbf16, #tpu.memory_space<vmem>>, %arg3: memref<32x64xbf16, #tpu.memory_space<vmem>>, %arg4: memref<1x64xf32, #tpu.memory_space<vmem>>, %arg5: memref<64x32xbf16, #tpu.memory_space<vmem>>, %arg6: memref<1x32xf32, #tpu.memory_space<vmem>>, %arg7: memref<1x32xf32, #tpu.memory_space<vmem>>, %arg8: memref<1x32xf32, #tpu.memory_space<vmem>>, %arg9: memref<16x32xbf16, #tpu.memory_space<vmem>>, %arg10: memref<16x32xf32, #tpu.memory_space<vmem>>) attributes {dimension_semantics = [#tpu.dimension_semantics<parallel>, #tpu.dimension_semantics<arbitrary>], iteration_bounds = array<i64: 1, 1>, scalar_prefetch = 0 : i64, scratch_operands = 1 : i64, tpu.core_type = #tpu.core_type<tc>, window_params = [{transform_indices = @transform_0, window_bounds = array<i64: 16, 32>}, {transform_indices = @transform_1, window_bounds = array<i64: 32, 64>}, {transform_indices = @transform_2, window_bounds = array<i64: 1, 64>}, {transform_indices = @transform_3, window_bounds = array<i64: 64, 32>}, {pipeline_mode = #tpu.pipeline_mode<synchronous>, transform_indices = @transform_4, window_bounds = array<i64: 1, 32>}, {pipeline_mode = #tpu.pipeline_mode<synchronous>, transform_indices = @transform_5, window_bounds = array<i64: 1, 32>}, {pipeline_mode = #tpu.pipeline_mode<synchronous>, transform_indices = @transform_6, window_bounds = array<i64: 1, 32>}, {transform_indices = @transform_7, window_bounds = array<i64: 16, 32>}]} {
    %c0_i32 = arith.constant 0 : i32
    %0 = arith.cmpi eq, %arg1, %c0_i32 : i32
    %1 = arith.extui %0 : i1 to i32
    %c0_i32_0 = arith.constant 0 : i32
    %2 = arith.cmpi ne, %1, %c0_i32_0 : i32
    scf.if %2 {
      %cst_18 = arith.constant 0.000000e+00 : f32
      %26 = vector.broadcast %cst_18 : f32 to vector<16x32xf32>
      %c0_19 = arith.constant 0 : index
      %c0_20 = arith.constant 0 : index
      %27 = vector.load %arg10[%c0_19, %c0_20] : memref<16x32xf32, #tpu.memory_space<vmem>>, vector<16x32xf32>
      tpu.vector_store %arg10[%c0_19, %c0_20], %26 {strides = array<i32>} : memref<16x32xf32, #tpu.memory_space<vmem>>, vector<16x32xf32>,
    } else {
    }
    %c0 = arith.constant 0 : index
    %c0_1 = arith.constant 0 : index
    %3 = vector.load %arg2[%c0, %c0_1] : memref<16x32xbf16, #tpu.memory_space<vmem>>, vector<16x32xbf16>
    %c0_2 = arith.constant 0 : index
    %c0_3 = arith.constant 0 : index
    %4 = vector.load %arg3[%c0_2, %c0_3] : memref<32x64xbf16, #tpu.memory_space<vmem>>, vector<32x64xbf16>
    %cst = arith.constant dense<0.000000e+00> : vector<16x64xf32>
    %5 = tpu.matmul %3, %4, %cst {dimension_numbers = #tpu.dot_dimension_numbers<[1], [0], [0], [1], [0, 0, 1, 1], [], []>} : vector<16x32xbf16>, vector<32x64xbf16>, vector<16x64xf32> -> vector<16x64xf32>
    %c0_4 = arith.constant 0 : index
    %c0_5 = arith.constant 0 : index
    %6 = vector.load %arg4[%c0_4, %c0_5] : memref<1x64xf32, #tpu.memory_space<vmem>>, vector<1x64xf32>
    %7 = vector.broadcast %6 : vector<1x64xf32> to vector<16x64xf32>
    %8 = arith.addf %5, %7 : vector<16x64xf32>
    %cst_6 = arith.constant 5.000000e-01 : f32
    %9 = vector.broadcast %cst_6 : f32 to vector<16x64xf32>
    %10 = arith.mulf %9, %8 : vector<16x64xf32>
    %cst_7 = arith.constant 0.707106769 : f32
    %11 = vector.broadcast %cst_7 : f32 to vector<16x64xf32>
    %12 = arith.mulf %8, %11 : vector<16x64xf32>
    %13 = math.erf %12 : vector<16x64xf32>
    %cst_8 = arith.constant 1.000000e+00 : f32
    %14 = vector.broadcast %cst_8 : f32 to vector<16x64xf32>
    %15 = arith.addf %14, %13 : vector<16x64xf32>
    %16 = arith.mulf %10, %15 : vector<16x64xf32>
    %c0_9 = arith.constant 0 : index
    %c0_10 = arith.constant 0 : index
    %17 = vector.load %arg10[%c0_9, %c0_10] : memref<16x32xf32, #tpu.memory_space<vmem>>, vector<16x32xf32>
    %18 = arith.truncf %16 : vector<16x64xf32> to vector<16x64xbf16>
    %c0_11 = arith.constant 0 : index
    %c0_12 = arith.constant 0 : index
    %19 = vector.load %arg5[%c0_11, %c0_12] : memref<64x32xbf16, #tpu.memory_space<vmem>>, vector<64x32xbf16>
    %cst_13 = arith.constant dense<0.000000e+00> : vector<16x32xf32>
    %20 = tpu.matmul %18, %19, %cst_13 {dimension_numbers = #tpu.dot_dimension_numbers<[1], [0], [0], [1], [0, 0, 1, 1], [], []>} : vector<16x64xbf16>, vector<64x32xbf16>, vector<16x32xf32> -> vector<16x32xf32>
    %21 = arith.addf %17, %20 : vector<16x32xf32>
    %c0_14 = arith.constant 0 : index
    %c0_15 = arith.constant 0 : index
    %22 = vector.load %arg10[%c0_14, %c0_15] : memref<16x32xf32, #tpu.memory_space<vmem>>, vector<16x32xf32>
    tpu.vector_store %arg10[%c0_14, %c0_15], %21 {strides = array<i32>} : memref<16x32xf32, #tpu.memory_space<vmem>>, vector<16x32xf32>,
    %c0_i32_16 = arith.constant 0 : i32
    %23 = arith.cmpi eq, %arg1, %c0_i32_16 : i32
    %24 = arith.extui %23 : i1 to i32
    %c0_i32_17 = arith.constant 0 : i32
    %25 = arith.cmpi ne, %24, %c0_i32_17 : i32
    scf.if %25 {
      %c0_18 = arith.constant 0 : index
      %c0_19 = arith.constant 0 : index
      %26 = vector.load %arg10[%c0_18, %c0_19] : memref<16x32xf32, #tpu.memory_space<vmem>>, vector<16x32xf32>
      %c0_20 = arith.constant 0 : index
      %c0_21 = arith.constant 0 : index
      %27 = vector.load %arg6[%c0_20, %c0_21] : memref<1x32xf32, #tpu.memory_space<vmem>>, vector<1x32xf32>
      %28 = vector.broadcast %27 : vector<1x32xf32> to vector<16x32xf32>
      %29 = arith.addf %26, %28 : vector<16x32xf32>
      %30 = arith.extf %3 : vector<16x32xbf16> to vector<16x32xf32>
      %31 = arith.addf %29, %30 : vector<16x32xf32>
      %cst_22 = arith.constant dense<0.000000e+00> : vector<16xf32>
      %32 = vector.multi_reduction <add>, %31, %cst_22 [1] : vector<16x32xf32> to vector<16xf32>
      %33 = vector.shape_cast %32 : vector<16xf32> to vector<16x1xf32>
      %cst_23 = arith.constant 3.200000e+01 : f32
      %34 = vector.broadcast %cst_23 : f32 to vector<16x1xf32>
      %35 = arith.divf %33, %34 : vector<16x1xf32>
      %36 = vector.broadcast %35 : vector<16x1xf32> to vector<16x32xf32>
      %37 = arith.subf %31, %36 : vector<16x32xf32>
      %38 = arith.mulf %37, %37 : vector<16x32xf32>
      %cst_24 = arith.constant dense<0.000000e+00> : vector<16xf32>
      %39 = vector.multi_reduction <add>, %38, %cst_24 [1] : vector<16x32xf32> to vector<16xf32>
      %40 = vector.shape_cast %39 : vector<16xf32> to vector<16x1xf32>
      %cst_25 = arith.constant 3.200000e+01 : f32
      %41 = vector.broadcast %cst_25 : f32 to vector<16x1xf32>
      %42 = arith.divf %40, %41 : vector<16x1xf32>
      %43 = vector.broadcast %35 : vector<16x1xf32> to vector<16x32xf32>
      %44 = arith.subf %31, %43 : vector<16x32xf32>
      %cst_26 = arith.constant 9.99999974E-6 : f32
      %45 = vector.broadcast %cst_26 : f32 to vector<16x1xf32>
      %46 = arith.addf %42, %45 : vector<16x1xf32>
      %47 = math.rsqrt %46 : vector<16x1xf32>
      %48 = vector.broadcast %47 : vector<16x1xf32> to vector<16x32xf32>
      %49 = arith.mulf %44, %48 : vector<16x32xf32>
      %c0_27 = arith.constant 0 : index
      %c0_28 = arith.constant 0 : index
      %50 = vector.load %arg7[%c0_27, %c0_28] : memref<1x32xf32, #tpu.memory_space<vmem>>, vector<1x32xf32>
      %51 = vector.broadcast %50 : vector<1x32xf32> to vector<16x32xf32>
      %52 = arith.mulf %49, %51 : vector<16x32xf32>
      %c0_29 = arith.constant 0 : index
      %c0_30 = arith.constant 0 : index
      %53 = vector.load %arg8[%c0_29, %c0_30] : memref<1x32xf32, #tpu.memory_space<vmem>>, vector<1x32xf32>
      %54 = vector.broadcast %53 : vector<1x32xf32> to vector<16x32xf32>
      %55 = arith.addf %52, %54 : vector<16x32xf32>
      %56 = arith.truncf %55 : vector<16x32xf32> to vector<16x32xbf16>
      %c0_31 = arith.constant 0 : index
      %c0_32 = arith.constant 0 : index
      %57 = vector.load %arg9[%c0_31, %c0_32] : memref<16x32xbf16, #tpu.memory_space<vmem>>, vector<16x32xbf16>
      tpu.vector_store %arg9[%c0_31, %c0_32], %56 {strides = array<i32>} : memref<16x32xbf16, #tpu.memory_space<vmem>>, vector<16x32xbf16>,
    } else {
    }
    return
  }
  func.func @transform_0(%arg0: i32, %arg1: i32) -> (i32, i32) {
    %c0_i32 = arith.constant 0 : i32
    %c0_i32_0 = arith.constant 0 : i32
    return %arg0, %c0_i32 : i32, i32
  }
  func.func @transform_1(%arg0: i32, %arg1: i32) -> (i32, i32) {
    %c0_i32 = arith.constant 0 : i32
    %c0_i32_0 = arith.constant 0 : i32
    return %c0_i32, %arg1 : i32, i32
  }
  func.func @transform_2(%arg0: i32, %arg1: i32) -> (i32, i32) {
    %c0_i32 = arith.constant 0 : i32
    %c0_i32_0 = arith.constant 0 : i32
    return %c0_i32, %arg1 : i32, i32
  }
  func.func @transform_3(%arg0: i32, %arg1: i32) -> (i32, i32) {
    %c0_i32 = arith.constant 0 : i32
    %c0_i32_0 = arith.constant 0 : i32
    return %arg1, %c0_i32 : i32, i32
  }
  func.func @transform_4(%arg0: i32, %arg1: i32) -> (i32, i32) {
    %c0_i32 = arith.constant 0 : i32
    %c0_i32_0 = arith.constant 0 : i32
    %c0_i32_1 = arith.constant 0 : i32
    return %c0_i32, %c0_i32_0 : i32, i32
  }
  func.func @transform_5(%arg0: i32, %arg1: i32) -> (i32, i32) {
    %c0_i32 = arith.constant 0 : i32
    %c0_i32_0 = arith.constant 0 : i32
    %c0_i32_1 = arith.constant 0 : i32
    return %c0_i32, %c0_i32_0 : i32, i32
  }
  func.func @transform_6(%arg0: i32, %arg1: i32) -> (i32, i32) {
    %c0_i32 = arith.constant 0 : i32
    %c0_i32_0 = arith.constant 0 : i32
    %c0_i32_1 = arith.constant 0 : i32
    return %c0_i32, %c0_i32_0 : i32, i32
  }
  func.func @transform_7(%arg0: i32, %arg1: i32) -> (i32, i32) {
    %c0_i32 = arith.constant 0 : i32
    %c0_i32_0 = arith.constant 0 : i32
    return %arg0, %c0_i32 : i32, i32
  }
}

module attributes {stable_mosaic.version = 11 : i64} {
  func.func @_pool_cls_kernel(%arg0: i32, %arg1: memref<2x32xbf16, #tpu.memory_space<vmem>>, %arg2: memref<32x32xbf16, #tpu.memory_space<vmem>>, %arg3: memref<1x32xf32, #tpu.memory_space<vmem>>, %arg4: memref<32x128xbf16, #tpu.memory_space<vmem>>, %arg5: memref<1x128xf32, #tpu.memory_space<vmem>>, %arg6: memref<2x128xf32, #tpu.memory_space<vmem>>) attributes {dimension_semantics = [#tpu.dimension_semantics<arbitrary>], iteration_bounds = array<i64: 1>, scalar_prefetch = 0 : i64, scratch_operands = 0 : i64, tpu.core_type = #tpu.core_type<tc>, window_params = [{pipeline_mode = #tpu.pipeline_mode<synchronous>, transform_indices = @transform_0, window_bounds = array<i64: 2, 32>}, {pipeline_mode = #tpu.pipeline_mode<synchronous>, transform_indices = @transform_1, window_bounds = array<i64: 32, 32>}, {pipeline_mode = #tpu.pipeline_mode<synchronous>, transform_indices = @transform_2, window_bounds = array<i64: 1, 32>}, {pipeline_mode = #tpu.pipeline_mode<synchronous>, transform_indices = @transform_3, window_bounds = array<i64: 32, 128>}, {pipeline_mode = #tpu.pipeline_mode<synchronous>, transform_indices = @transform_4, window_bounds = array<i64: 1, 128>}, {pipeline_mode = #tpu.pipeline_mode<synchronous>, transform_indices = @transform_5, window_bounds = array<i64: 2, 128>}]} {
    %c0 = arith.constant 0 : index
    %c0_0 = arith.constant 0 : index
    %0 = vector.load %arg1[%c0, %c0_0] : memref<2x32xbf16, #tpu.memory_space<vmem>>, vector<2x32xbf16>
    %c0_1 = arith.constant 0 : index
    %c0_2 = arith.constant 0 : index
    %1 = vector.load %arg2[%c0_1, %c0_2] : memref<32x32xbf16, #tpu.memory_space<vmem>>, vector<32x32xbf16>
    %cst = arith.constant dense<0.000000e+00> : vector<2x32xf32>
    %2 = tpu.matmul %0, %1, %cst {dimension_numbers = #tpu.dot_dimension_numbers<[1], [0], [0], [1], [0, 0, 1, 1], [], []>} : vector<2x32xbf16>, vector<32x32xbf16>, vector<2x32xf32> -> vector<2x32xf32>
    %c0_3 = arith.constant 0 : index
    %c0_4 = arith.constant 0 : index
    %3 = vector.load %arg3[%c0_3, %c0_4] : memref<1x32xf32, #tpu.memory_space<vmem>>, vector<1x32xf32>
    %4 = vector.broadcast %3 : vector<1x32xf32> to vector<2x32xf32>
    %5 = arith.addf %2, %4 : vector<2x32xf32>
    %6 = math.tanh %5 : vector<2x32xf32>
    %7 = arith.truncf %6 : vector<2x32xf32> to vector<2x32xbf16>
    %c0_5 = arith.constant 0 : index
    %c0_6 = arith.constant 0 : index
    %8 = vector.load %arg4[%c0_5, %c0_6] : memref<32x128xbf16, #tpu.memory_space<vmem>>, vector<32x128xbf16>
    %cst_7 = arith.constant dense<0.000000e+00> : vector<2x128xf32>
    %9 = tpu.matmul %7, %8, %cst_7 {dimension_numbers = #tpu.dot_dimension_numbers<[1], [0], [0], [1], [0, 0, 1, 1], [], []>} : vector<2x32xbf16>, vector<32x128xbf16>, vector<2x128xf32> -> vector<2x128xf32>
    %c0_8 = arith.constant 0 : index
    %c0_9 = arith.constant 0 : index
    %10 = vector.load %arg5[%c0_8, %c0_9] : memref<1x128xf32, #tpu.memory_space<vmem>>, vector<1x128xf32>
    %11 = vector.broadcast %10 : vector<1x128xf32> to vector<2x128xf32>
    %12 = arith.addf %9, %11 : vector<2x128xf32>
    %c0_10 = arith.constant 0 : index
    %c0_11 = arith.constant 0 : index
    %13 = vector.load %arg6[%c0_10, %c0_11] : memref<2x128xf32, #tpu.memory_space<vmem>>, vector<2x128xf32>
    tpu.vector_store %arg6[%c0_10, %c0_11], %12 {strides = array<i32>} : memref<2x128xf32, #tpu.memory_space<vmem>>, vector<2x128xf32>,
    return
  }
  func.func @transform_0(%arg0: i32) -> (i32, i32) {
    %c0_i32 = arith.constant 0 : i32
    %c0_i32_0 = arith.constant 0 : i32
    %c0_i32_1 = arith.constant 0 : i32
    return %c0_i32, %c0_i32_0 : i32, i32
  }
  func.func @transform_1(%arg0: i32) -> (i32, i32) {
    %c0_i32 = arith.constant 0 : i32
    %c0_i32_0 = arith.constant 0 : i32
    %c0_i32_1 = arith.constant 0 : i32
    return %c0_i32, %c0_i32_0 : i32, i32
  }
  func.func @transform_2(%arg0: i32) -> (i32, i32) {
    %c0_i32 = arith.constant 0 : i32
    %c0_i32_0 = arith.constant 0 : i32
    %c0_i32_1 = arith.constant 0 : i32
    return %c0_i32, %c0_i32_0 : i32, i32
  }
  func.func @transform_3(%arg0: i32) -> (i32, i32) {
    %c0_i32 = arith.constant 0 : i32
    %c0_i32_0 = arith.constant 0 : i32
    %c0_i32_1 = arith.constant 0 : i32
    return %c0_i32, %c0_i32_0 : i32, i32
  }
  func.func @transform_4(%arg0: i32) -> (i32, i32) {
    %c0_i32 = arith.constant 0 : i32
    %c0_i32_0 = arith.constant 0 : i32
    %c0_i32_1 = arith.constant 0 : i32
    return %c0_i32, %c0_i32_0 : i32, i32
  }
  func.func @transform_5(%arg0: i32) -> (i32, i32) {
    %c0_i32 = arith.constant 0 : i32
    %c0_i32_0 = arith.constant 0 : i32
    %c0_i32_1 = arith.constant 0 : i32
    return %c0_i32, %c0_i32_0 : i32, i32
  }
}

</mosaic_0001>

<bundles_post_ra>
// kernel: roberta_classifier_forward.11
= control target key start
LH: loop header
LB: loop body
LE: loop exit
PB: predicated region body
PF: predicated region fallthrough
CT: control target
= control target key end

     0   :  { %vm45_vm0 = vcmask 261120   ;;  %vm67_vm1 = vcmask 257024   ;;  %s121_s26 = smov 64   ;;  %s189_s1 = inlined_call_operand.vmem [shape: bf16[32,96], index: 1, kind: input, shape index: {}]   ;;  %s190_s2 = inlined_call_operand.vmem [shape: f32[1,96], index: 2, kind: input, shape index: {}]   ;;  %s191_s0 = inlined_call_operand.vmem [shape: bf16[16,32], index: 0, kind: input, shape index: {}]   ;;  %s192_s3 = inlined_call_operand.vmem [shape: bf16[16,32], index: 3, kind: output, shape index: {0}]   ;;  %s193_s5 = inlined_call_operand.vmem [shape: bf16[16,32], index: 5, kind: output, shape index: {2}]   ;;  %s194_s4 = inlined_call_operand.vmem [shape: bf16[16,32], index: 4, kind: output, shape index: {1}]  }
   0x1   :  { %v117_v0 = vld [vmem:[%s189_s1 + $0x8] sm:$0xff]  ;;  %v116_v1 = vld [vmem:[%s189_s1] sm:$0xff]  ;;  %s122_s1 = smov 96  }
   0x2   :  { %55 = vmatpush.bf16.msra.mxu0 %v117_v0  ;;  %v115_v2 = vld [vmem:[%s191_s0] sm:$0xff] }
   0x3   :  { %v120_v3 = vld [vmem:[%s190_s2] ss:$0 sm:$0xff] }
   0x6   :  { %56 = vmatpush.bf16.msra.mxu0 %v116_v1 }
   0x9   :  { %114 = vmatmul.msk.bf16.vlgmr.msra.gmra.mxu0 %vm45_vm0, %v115_v2 }
  0x86   :  { %v58_v4 = vpop.f32.mrf.mxu0 }
  0x87   :  { %v59_v5 = vadd.f32 %v120_v3, %v58_v4 }
  0x89   :  { %v63_v6 = vmul.f32 0.35355338, %v59_v5  ;;  %v70_v7 = vpack.c.bf16 %v59_v5, %v59_v5 }
  0x8b   :  { %v65_v8 = vpack.c.bf16 %v63_v6, %v63_v6  ;;  %82 = vrot.lane.b32.xlu1 %v70_v7, %s121_s26  ;;  %74 = vrot.lane.b32.xlu0 %v70_v7, %s122_s1 }
  0x8d   :  { %68 = vst.msk [vmem:[%s192_s3] sm:$0xf] %vm67_vm1, %v65_v8 }
  0x8e   :  { %v60_v9 = vpop.f32.mrf.mxu0 }
  0x8f   :  { %v61_v10 = vadd.f32 %v120_v3, %v60_v9 }
  0x91   :  { %v64_v11 = vmul.f32 0.35355338, %v61_v10  ;;  %v71_v12 = vpack.c.bf16 %v61_v10, %v61_v10 }
  0x93   :  { %v66_v13 = vpack.c.bf16 %v64_v11, %v64_v11  ;;  %84 = vrot.lane.b32.xlu1 %v71_v12, %s121_s26  ;;  %76 = vrot.lane.b32.xlu0 %v71_v12, %s122_s1 }
  0x95   :  { %69 = vst.msk [vmem:[%s192_s3 + $0x4] sm:$0xf] %vm67_vm1, %v66_v13 }
  0xfd   :  { %v83_v14 = vpop.permute.xlu1 %82  ;;  %v75_v15 = vpop.permute.xlu0 %74 }
  0xfe   :  { %88 = vst.msk [vmem:[%s193_s5] sm:$0xf] %vm67_vm1, %v83_v14 }
  0xff   :  { %80 = vst.msk [vmem:[%s194_s4] sm:$0xf] %vm67_vm1, %v75_v15 }
 0x105   :  { %v85_v16 = vpop.permute.xlu1 %84  ;;  %v77_v17 = vpop.permute.xlu0 %76 }
 0x106   :  { %89 = vst.msk [vmem:[%s193_s5 + $0x4] sm:$0xf] %vm67_vm1, %v85_v16 }
 0x107   :  { %81 = vst.msk [vmem:[%s194_s4 + $0x4] sm:$0xf] %vm67_vm1, %v77_v17 }

// kernel: roberta_classifier_forward.10
= control target key start
LH: loop header
LB: loop body
LE: loop exit
PB: predicated region body
PF: predicated region fallthrough
CT: control target
= control target key end

     0   :  { %vm18_vm0 = vcmask 261120   ;;  %v104_v5 = vmov 32.0   ;;  %vm84_vm6 = vcmask 257024   ;;  %s144_s0 = inlined_call_operand.vmem [shape: bf16[16,32], index: 0, kind: input, shape index: {}]   ;;  %s145_s1 = inlined_call_operand.vmem [shape: f32[1,32], index: 1, kind: input, shape index: {}]   ;;  %s146_s2 = inlined_call_operand.vmem [shape: f32[1,32], index: 2, kind: input, shape index: {}]   ;;  %s147_s3 = inlined_call_operand.vmem [shape: bf16[16,32], index: 3, kind: output, shape index: {}]  }
   0x1   :  { %v92_v0 = vld [vmem:[%s144_s0] sm:$0xff]   ;;  %98 = vrcp.f32 %v104_v5 }
   0x2   :  { %v93_v1 = vunpack.c.l.bf16 %v92_v0  ;;  %v94_v3 = vunpack.c.h.bf16 %v92_v0  ;;  %v96_v36 = vld [vmem:[%s145_s1] ss:$0 sm:$0xff] }
   0x3   :  { %v97_v39 = vld [vmem:[%s146_s2] ss:$0 sm:$0xff] }
   0x4   :  { %v19_v2 = vsel %vm18_vm0, %v93_v1, 0.0  ;;  %v22_v4 = vsel %vm18_vm0, %v94_v3, 0.0 }
   0x5   :  { %20 = vadd.xlane.f32.xlu0 %v19_v2 }
   0x7   :  { %v99_v6 = vpop.eup %98 }
   0x8   :  { %v26_v7 = vmul.f32 32.0, %v99_v6  ;;  %vm30_vm1 = vweird.f32 %v99_v6 }
   0xa   :  { %v27_v8 = vsub.f32 1.0, %v26_v7 }
   0xc   :  { %v28_v9 = vmul.f32 %v99_v6, %v27_v8 }
   0xd   :  { %23 = vadd.xlane.f32.xlu0 %v22_v4 }
   0xe   :  { %v29_v10 = vadd.f32 %v99_v6, %v28_v9 }
  0x10   :  { %v31_v11 = vsel %vm30_vm1, %v99_v6, %v29_v10 }
  0x78   :  { %v21_v12 = vpop.xlane.xlu0 %20 }
  0x79   :  { %v32_v13 = vmul.f32 %v31_v11, %v21_v12 }
  0x7b   :  { %v34_v14 = vsub.f32 %v93_v1, %v32_v13 }
  0x7d   :  { %v36_v15 = vmul.f32 %v34_v14, %v34_v14 }
  0x7f   :  { %v38_v16 = vsel %vm18_vm0, %v36_v15, 0.0 }
  0x80   :  { %39 = vadd.xlane.f32.xlu1 %v38_v16  ;;  %v24_v17 = vpop.xlane.xlu0 %23 }
  0x81   :  { %v33_v18 = vmul.f32 %v31_v11, %v24_v17 }
  0x83   :  { %v35_v19 = vsub.f32 %v94_v3, %v33_v18 }
  0x85   :  { %v37_v20 = vmul.f32 %v35_v19, %v35_v19 }
  0x87   :  { %v41_v21 = vsel %vm18_vm0, %v37_v20, 0.0 }
  0x88   :  { %42 = vadd.xlane.f32.xlu1 %v41_v21 }
  0xf3   :  { %v40_v22 = vpop.xlane.xlu1 %39 }
  0xf4   :  { %v44_v23 = vmul.f32 %v40_v22, %v31_v11 }
  0xf6   :  { %v46_v24 = vadd.f32 1e-05, %v44_v23 }
  0xf8   :  { %100 = vrsqrt.f32 %v46_v24  ;;  %vm54_vm3 = vweird.f32 %v46_v24 }
  0xfb   :  { %v43_v25 = vpop.xlane.xlu1 %42 }
  0xfc   :  { %v45_v26 = vmul.f32 %v43_v25, %v31_v11 }
  0xfe   :  { %v101_v27 = vpop.eup %100  ;;  %v47_v28 = vadd.f32 1e-05, %v45_v26 }
  0xff   :  { %v49_v29 = vmul.f32 %v101_v27, %v46_v24  ;;  %vm55_vm2 = vweird.f32 %v101_v27 }
 0x100   :  { %102 = vrsqrt.f32 %v47_v28  ;;  %vm56_vm4 = vmor %vm54_vm3, %vm55_vm2  ;;  %vm64_vm7 = vweird.f32 %v47_v28 }
 0x101   :  { %v50_v30 = vmul.f32 %v101_v27, %v49_v29 }
 0x103   :  { %v51_v31 = vmul.f32 0.5, %v50_v30 }
 0x105   :  { %v52_v32 = vsub.f32 1.5, %v51_v31 }
 0x106   :  { %v103_v33 = vpop.eup %102 }
 0x107   :  { %v53_v34 = vmul.f32 %v101_v27, %v52_v32  ;;  %v59_v35 = vmul.f32 %v103_v33, %v47_v28  ;;  %vm65_vm5 = vweird.f32 %v103_v33 }
 0x108   :  { %vm66_vm8 = vmor %vm64_vm7, %vm65_vm5 }
 0x109   :  { %v57_v37 = vsel %vm56_vm4, %v101_v27, %v53_v34  ;;  %v60_v38 = vmul.f32 %v103_v33, %v59_v35 }
 0x10a   :  { %v68_v40 = vmul.f32 %v57_v37, %v34_v14 }
 0x10b   :  { %v61_v41 = vmul.f32 0.5, %v60_v38 }
 0x10c   :  { %v74_v42 = vmul.f32 %v96_v36, %v68_v40 }
 0x10d   :  { %v62_v43 = vsub.f32 1.5, %v61_v41 }
 0x10e   :  { %v80_v44 = vadd.f32 %v97_v39, %v74_v42 }
 0x10f   :  { %v63_v45 = vmul.f32 %v103_v33, %v62_v43 }
 0x110   :  { %v82_v46 = vpack.c.bf16 %v80_v44, %v80_v44 }
 0x111   :  { %v67_v47 = vsel %vm66_vm8, %v103_v33, %v63_v45 }
 0x112   :  { %85 = vst.msk [vmem:[%s147_s3] sm:$0xf] %vm84_vm6, %v82_v46  ;;  %v69_v48 = vmul.f32 %v67_v47, %v35_v19 }
 0x114   :  { %v75_v49 = vmul.f32 %v96_v36, %v69_v48 }
 0x116   :  { %v81_v50 = vadd.f32 %v97_v39, %v75_v49 }
 0x118   :  { %v83_v51 = vpack.c.bf16 %v81_v50, %v81_v50 }
 0x11a   :  { %86 = vst.msk [vmem:[%s147_s3 + $0x4] sm:$0xf] %vm84_vm6, %v83_v51 }

// kernel: roberta_classifier_forward.12
= control target key start
LH: loop header
LB: loop body
LE: loop exit
PB: predicated region body
PF: predicated region fallthrough
CT: control target
= control target key end

     0   :  { %s775_s15 = smov 0   ;;  %s777_s16 = smov 0   ;;  %s852_s0 = inlined_call_operand.vmem [shape: bf16[2,4,8,8], index: 0, kind: input, shape index: {}]   ;;  %s853_s1 = inlined_call_operand.vmem [shape: bf16[2,4,8,8], index: 1, kind: input, shape index: {}]   ;;  %s854_s2 = inlined_call_operand.vmem [shape: bf16[2,4,8,8], index: 2, kind: input, shape index: {}]   ;;  %s855_s3 = inlined_call_operand.vmem [shape: f32[2,1,8], index: 3, kind: input, shape index: {}]   ;;  %s856_s4 = inlined_call_operand.vmem [shape: bf16[2,4,8,8], index: 4, kind: output, shape index: {}]  }
   0x1   :  { %s779_s17 = smov 0   ;;  %s781_s18 = smov 0  }
   0x2   :  { %s783_s19 = smov 0  }
   0x3 LB: > { %s36_s20 = sadd.s32 1, %s737_s17  ;;  %s40_s21 = sadd.s32 1, %s741_s18  ;;  %s745_s19 = sphi %s783_s19, %s14_s19   ;;  %s741_s18 = sphi %s781_s18, %s860_s18   ;;  %s737_s17 = sphi %s779_s17, %s859_s17   ;;  %s733_s16 = sphi %s777_s16, %s858_s16   ;;  %s729_s15 = sphi %s775_s15, %s857_s15  }
   0x4   : > { %p38_p0 = scmp.ge.s32.totalorder %s36_s20, 4  ;;  %p641_p1 = scmp.ge.s32.totalorder %s745_s19, 1 }
   0x5   : > { %p255_p2 = scmp.lt.s32.totalorder %s745_s19, 9 }
   0x6   : > { %s862_s20 = smov (%p38_p0, %s36_s20), 0  ;;  %s864_s21 = smov (!%p38_p0, %s40_s21), %s741_s18 }
   0x7   : > { %p256_p3 = pnand %p641_p1, %p255_p2  ;;  %p42_p4 = scmp.ge.s32.totalorder %s864_s21, 2 }
   0x8   : > { %p321_p5 = scmp.lt.s32.totalorder (!%p256_p3), %s733_s16, 1  ;;  %p323_p6 = scmp.lt.s32.totalorder (!%p256_p3), %s729_s15, 3 }
   0x9   : > { %s866_s21 = smov (%p42_p4, %s864_s21), 0  ;;  %259 = sbr.rel (%p256_p3) target bundleno = 631 (0x277), region = 36 }
   0xe   : > { %s868_s16 = smov (!%p321_p5, %s733_s16), 1  ;;  %s870_s15 = smov (!%p323_p6, %s729_s15), 3  ;;  %vm379_vm0 = vcmask 64512   ;;  %vm376_vm1 = vcmask 7168   ;;  %v747_v3 = vmov -1e+30  }
   0xf   : > { %s642_s22 = sshll.u32 %s868_s16, 2  ;;  %s359_s25 = scalar_lea.vmem %s855_s3, %s868_s16  ;;  %377 = vst.msk [vmem:[#allocation2] sm:$0xff] %vm376_vm1, %v747_v3  ;;  %v748_v9 = vmov 0   ;;  %v749_v10 = vmov 0.0   ;;  %vm443_vm2 = vcmask 1043456   ;;  %vm476_vm3 = vcmask 60416  }
  0x10   : > { %s329_s26 = sadd.s32 %s642_s22, %s870_s15  ;;  %v700_v4 = vld [vmem:[%s359_s25] ss:$0 sm:$0xff]  ;;  %697 = vset.pattern.permute.xlu0 %v748_v9  ;;  %698 = vset.pattern.permute.xlu1 %v748_v9  ;;  %378 = vst.msk [vmem:[#allocation3] sm:$0xff] %vm376_vm1, %v749_v10 }
  0x11   : > { %s808_s27 = sshll.u32 %s329_s26, 2  ;;  %699 = vset.pattern.permute.xlu2 %v748_v9  ;;  %380 = vst.msk [vmem:[#allocation4] sm:$0xff] %vm379_vm0, %v749_v10 }
  0x12   : > { %s342_s30 = scalar_lea.vmem %s853_s1, %s808_s27  ;;  %s331_s7 = scalar_lea.vmem %s852_s0, %s808_s27 }
  0x13   : > { %v382_v0 = vld [vmem:[%s342_s30] sm:$0xf]  ;;  %s353_s10 = scalar_lea.vmem %s854_s2, %s808_s27  ;;  %s370_s13 = scalar_lea.vmem %s856_s4, %s808_s27 }
  0x14   : > { %v393_v1 = vsel %vm379_vm0, %v382_v0, 0  ;;  %v381_v2 = vld [vmem:[%s331_s7] sm:$0xf] }
  0x15   : > { %402 = vmatpush.bf16.xpose.msra.mxu0 %v393_v1  ;;  %v383_v15 = vld [vmem:[%s353_s10] sm:$0xf] }
  0x16   : > { %v408_v11 = vld [vmem:[#allocation2] sm:$0xff]  ;;  %v445_v16 = vsel %vm443_vm2, %v383_v15, 0 }
  0x17   : > { %454 = vmatpush.bf16.msra.mxu1 %v445_v16  ;;  %v424_v25 = vld [vmem:[#allocation3] sm:$0xff] }
  0x18   : > { %v432_v33 = vld [vmem:[#allocation4] sm:$0xff] }
  0x1c   : > { %650 = vmatmul.msk.bf16.vlgmr.msra.gmra.mxu0 %vm379_vm0, %v381_v2 }
  0x99   : > { %v404_v5 = vpop.f32.mrf.mxu0 }
  0x9a   : > { %v405_v6 = vadd.f32 %v700_v4, %v404_v5 }
  0x9c   : > { %v409_v7 = vsel %vm379_vm0, %v405_v6, -inf }
  0x9d   : > { %410 = vmax.xlane.f32.xlu0 %v409_v7 }
  0xa1   : > { %v406_v8 = vpop.f32.mrf.mxu0 }
 0x110   : > { %v411_v12 = vpop.xlane.xlu0 %410 }
 0x111   : > { %v412_v13 = vmax.f32 %v408_v11, %v411_v12 }
 0x113   : > { %v413_v14 = vsub.f32 %v408_v11, %v412_v13  ;;  %462 = vst.msk [vmem:[#allocation2] sm:$0xff] %vm376_vm1, %v412_v13  ;;  %418 = vperm.xlu0 %697, %v412_v13  }
 0x115   : > { %v414_v23 = vmul.f32 1.442695, %v413_v14 }
 0x185   : > { %v419_v17 = vpop.permute.xlu0 %418 }
 0x186   : > { %v421_v18 = vsub.f32 %v405_v6, %v419_v17 }
 0x188   : > { %v422_v19 = vmul.f32 1.442695, %v421_v18 }
 0x18a   : > { %701 = vpow2.f32 %v422_v19 }
 0x18b   : > { %703 = vpow2.f32 %v414_v23 }
 0x190   : > { %v702_v20 = vpop.eup %701 }
 0x191   : > { %v426_v21 = vsel %vm379_vm0, %v702_v20, 0.0  ;;  %v439_v22 = vpack.c.bf16 %v702_v20, %v702_v20  ;;  %v704_v24 = vpop.eup %703 }
 0x192   : > { %427 = vadd.xlane.f32.xlu1 %v426_v21  ;;  %v425_v26 = vmul.f32 %v704_v24, %v424_v25 }
 0x193   : > { %651 = vmatmul.msk.bf16.vlgmr.msra.gmra.mxu1 %vm379_vm0, %v439_v22 }
 0x1ab   : > { %435 = vperm.xlu1 %698, %v704_v24  }
 0x205   : > { %v428_v27 = vpop.xlane.xlu1 %427 }
 0x206   : > { %v429_v28 = vadd.f32 %v428_v27, %v425_v26 }
 0x208   : > { %431 = vst.msk [vmem:[#allocation3] sm:$0xff] %vm376_vm1, %v429_v28 }
 0x20f   : > { %v466_v29 = vld [vmem:[#allocation3] sm:$0xff] }
 0x210   : > { %v456_v30 = vpop.f32.mrf.mxu1  ;;  %705 = vrcp.f32 %v466_v29 }
 0x216   : > { %v706_v31 = vpop.eup %705 }
 0x217   : > { %471 = vperm.xlu2 %699, %v706_v31  }
 0x218   : > { %v458_v32 = vpop.f32.mrf.mxu1 }
 0x21d   : > { %v436_v34 = vpop.permute.xlu1 %435 }
 0x21e   : > { %v438_v35 = vmul.f32 %v436_v34, %v432_v33 }
 0x220   : > { %v460_v36 = vadd.f32 %v456_v30, %v438_v35 }
 0x222   : > { %461 = vst.msk [vmem:[#allocation4] sm:$0xff] %vm379_vm0, %v460_v36 }
 0x229   : > { %v468_v37 = vld [vmem:[#allocation4] sm:$0xff] }
 0x271   : > { %v472_v38 = vpop.permute.xlu2 %471 }
 0x272   : > { %v474_v39 = vmul.f32 %v472_v38, %v468_v37 }
 0x274   : > { %v475_v40 = vpack.c.bf16 %v474_v39, %v474_v39 }
 0x276   : > { %477 = vst.msk [vmem:[%s370_s13] sm:$0xf] %vm476_vm3, %v475_v40 }
 0x277 PF: > { %s14_s19 = sadd.s32 1, %s745_s19   ;;  %s857_s15 = smov %s737_s17 }
 0x278   : > { %p11_p7 = scmp.ge.s32.totalorder %s14_s19, 10   ;;  %s858_s16 = smov %s741_s18 }
 0x279   : > { %s859_s17 = smov %s862_s20  ;;  %s860_s18 = smov %s866_s21 }
 0x27a   :  { %13 = sbr.rel (!%p11_p7) target bundleno = 3 (0x3), region = 83 }

// kernel: roberta_classifier_forward.13
= control target key start
LH: loop header
LB: loop body
LE: loop exit
PB: predicated region body
PF: predicated region fallthrough
CT: control target
= control target key end

     0   :  { %vm51_vm0 = vcmask 261120   ;;  %v177_v15 = vmov 32.0   ;;  %vm140_vm6 = vcmask 257024   ;;  %s245_s1 = inlined_call_operand.vmem [shape: bf16[32,32], index: 1, kind: input, shape index: {}]   ;;  %s246_s2 = inlined_call_operand.vmem [shape: f32[1,32], index: 2, kind: input, shape index: {}]   ;;  %s247_s0 = inlined_call_operand.vmem [shape: bf16[16,32], index: 0, kind: input, shape index: {}]   ;;  %s248_s3 = inlined_call_operand.vmem [shape: bf16[16,32], index: 3, kind: input, shape index: {}]   ;;  %s249_s4 = inlined_call_operand.vmem [shape: f32[1,32], index: 4, kind: input, shape index: {}]   ;;  %s250_s5 = inlined_call_operand.vmem [shape: f32[1,32], index: 5, kind: input, shape index: {}]   ;;  %s251_s6 = inlined_call_operand.vmem [shape: bf16[16,32], index: 6, kind: output, shape index: {}]  }
   0x1   :  { %v162_v0 = vld [vmem:[%s245_s1 + $0x8] sm:$0xff]  ;;  %v161_v1 = vld [vmem:[%s245_s1] sm:$0xff]  ;;  %171 = vrcp.f32 %v177_v15 }
   0x2   :  { %61 = vmatpush.bf16.msra.mxu0 %v162_v0  ;;  %v160_v2 = vld [vmem:[%s247_s0] sm:$0xff] }
   0x3   :  { %v164_v3 = vld [vmem:[%s248_s3] sm:$0xff]  }
   0x4   :  { %v168_v4 = vld [vmem:[%s246_s2] ss:$0 sm:$0xff]  ;;  %v165_v5 = vunpack.c.l.bf16 %v164_v3  ;;  %v166_v10 = vunpack.c.h.bf16 %v164_v3 }
   0x5   :  { %v169_v46 = vld [vmem:[%s249_s4] ss:$0 sm:$0xff] }
   0x6   :  { %62 = vmatpush.bf16.msra.mxu0 %v161_v1  ;;  %v170_v49 = vld [vmem:[%s250_s5] ss:$0 sm:$0xff] }
   0x7   :  { %v172_v16 = vpop.eup %171 }
   0x8   :  { %v82_v17 = vmul.f32 32.0, %v172_v16  ;;  %vm86_vm1 = vweird.f32 %v172_v16 }
   0x9   :  { %159 = vmatmul.msk.bf16.vlgmr.msra.gmra.mxu0 %vm51_vm0, %v160_v2 }
   0xa   :  { %v83_v18 = vsub.f32 1.0, %v82_v17 }
   0xc   :  { %v84_v19 = vmul.f32 %v172_v16, %v83_v18 }
   0xe   :  { %v85_v20 = vadd.f32 %v172_v16, %v84_v19 }
  0x10   :  { %v87_v21 = vsel %vm86_vm1, %v172_v16, %v85_v20 }
  0x86   :  { %v64_v6 = vpop.f32.mrf.mxu0 }
  0x87   :  { %v65_v7 = vadd.f32 %v168_v4, %v64_v6 }
  0x89   :  { %v73_v8 = vadd.f32 %v165_v5, %v65_v7 }
  0x8b   :  { %v75_v9 = vsel %vm51_vm0, %v73_v8, 0.0 }
  0x8c   :  { %76 = vadd.xlane.f32.xlu0 %v75_v9 }
  0x8e   :  { %v66_v11 = vpop.f32.mrf.mxu0 }
  0x8f   :  { %v67_v12 = vadd.f32 %v168_v4, %v66_v11 }
  0x91   :  { %v74_v13 = vadd.f32 %v166_v10, %v67_v12 }
  0x93   :  { %v78_v14 = vsel %vm51_vm0, %v74_v13, 0.0 }
  0x94   :  { %79 = vadd.xlane.f32.xlu0 %v78_v14 }
  0xff   :  { %v77_v22 = vpop.xlane.xlu0 %76 }
 0x100   :  { %v88_v23 = vmul.f32 %v87_v21, %v77_v22 }
 0x102   :  { %v90_v24 = vsub.f32 %v73_v8, %v88_v23 }
 0x104   :  { %v92_v25 = vmul.f32 %v90_v24, %v90_v24 }
 0x106   :  { %v94_v26 = vsel %vm51_vm0, %v92_v25, 0.0 }
 0x107   :  { %95 = vadd.xlane.f32.xlu1 %v94_v26  ;;  %v80_v27 = vpop.xlane.xlu0 %79 }
 0x108   :  { %v89_v28 = vmul.f32 %v87_v21, %v80_v27 }
 0x10a   :  { %v91_v29 = vsub.f32 %v74_v13, %v89_v28 }
 0x10c   :  { %v93_v30 = vmul.f32 %v91_v29, %v91_v29 }
 0x10e   :  { %v97_v31 = vsel %vm51_vm0, %v93_v30, 0.0 }
 0x10f   :  { %98 = vadd.xlane.f32.xlu1 %v97_v31 }
 0x17a   :  { %v96_v32 = vpop.xlane.xlu1 %95 }
 0x17b   :  { %v100_v33 = vmul.f32 %v96_v32, %v87_v21 }
 0x17d   :  { %v102_v34 = vadd.f32 1e-05, %v100_v33 }
 0x17f   :  { %173 = vrsqrt.f32 %v102_v34  ;;  %vm110_vm3 = vweird.f32 %v102_v34 }
 0x182   :  { %v99_v35 = vpop.xlane.xlu1 %98 }
 0x183   :  { %v101_v36 = vmul.f32 %v99_v35, %v87_v21 }
 0x185   :  { %v174_v37 = vpop.eup %173  ;;  %v103_v38 = vadd.f32 1e-05, %v101_v36 }
 0x186   :  { %v105_v39 = vmul.f32 %v174_v37, %v102_v34  ;;  %vm111_vm2 = vweird.f32 %v174_v37 }
 0x187   :  { %175 = vrsqrt.f32 %v103_v38  ;;  %vm112_vm4 = vmor %vm110_vm3, %vm111_vm2  ;;  %vm120_vm7 = vweird.f32 %v103_v38 }
 0x188   :  { %v106_v40 = vmul.f32 %v174_v37, %v105_v39 }
 0x18a   :  { %v107_v41 = vmul.f32 0.5, %v106_v40 }
 0x18c   :  { %v108_v42 = vsub.f32 1.5, %v107_v41 }
 0x18d   :  { %v176_v43 = vpop.eup %175 }
 0x18e   :  { %v109_v44 = vmul.f32 %v174_v37, %v108_v42  ;;  %v115_v45 = vmul.f32 %v176_v43, %v103_v38  ;;  %vm121_vm5 = vweird.f32 %v176_v43 }
 0x18f   :  { %vm122_vm8 = vmor %vm120_vm7, %vm121_vm5 }
 0x190   :  { %v113_v47 = vsel %vm112_vm4, %v174_v37, %v109_v44  ;;  %v116_v48 = vmul.f32 %v176_v43, %v115_v45 }
 0x191   :  { %v124_v50 = vmul.f32 %v113_v47, %v90_v24 }
 0x192   :  { %v117_v51 = vmul.f32 0.5, %v116_v48 }
 0x193   :  { %v130_v52 = vmul.f32 %v169_v46, %v124_v50 }
 0x194   :  { %v118_v53 = vsub.f32 1.5, %v117_v51 }
 0x195   :  { %v136_v54 = vadd.f32 %v170_v49, %v130_v52 }
 0x196   :  { %v119_v55 = vmul.f32 %v176_v43, %v118_v53 }
 0x197   :  { %v138_v56 = vpack.c.bf16 %v136_v54, %v136_v54 }
 0x198   :  { %v123_v57 = vsel %vm122_vm8, %v176_v43, %v119_v55 }
 0x199   :  { %141 = vst.msk [vmem:[%s251_s6] sm:$0xf] %vm140_vm6, %v138_v56  ;;  %v125_v58 = vmul.f32 %v123_v57, %v91_v29 }
 0x19b   :  { %v131_v59 = vmul.f32 %v169_v46, %v125_v58 }
 0x19d   :  { %v137_v60 = vadd.f32 %v170_v49, %v131_v59 }
 0x19f   :  { %v139_v61 = vpack.c.bf16 %v137_v60, %v137_v60 }
 0x1a1   :  { %142 = vst.msk [vmem:[%s251_s6 + $0x4] sm:$0xf] %vm140_vm6, %v139_v61 }

// kernel: roberta_classifier_forward.19
= control target key start
LH: loop header
LB: loop body
LE: loop exit
PB: predicated region body
PF: predicated region fallthrough
CT: control target
= control target key end

     0   :  { %s223_s0 = inlined_call_operand.vmem [shape: bf16[2,32], index: 0, kind: input, shape index: {}]   ;;  %s224_s1 = inlined_call_operand.vmem [shape: bf16[32,32], index: 1, kind: input, shape index: {}]   ;;  %s225_s2 = inlined_call_operand.vmem [shape: f32[1,32], index: 2, kind: input, shape index: {}]   ;;  %s226_s3 = inlined_call_operand.vmem [shape: bf16[32,128], index: 3, kind: input, shape index: {}]   ;;  %s227_s4 = inlined_call_operand.vmem [shape: f32[1,128], index: 4, kind: input, shape index: {}]   ;;  %s228_s5 = inlined_call_operand.hbm [shape: f32[2,128], index: 5, kind: output, shape index: {}]  }
   0x1   :  { %v134_v0 = vld [vmem:[%s224_s1 + $0x8] sm:$0xff]  ;;  %v133_v1 = vld [vmem:[%s224_s1] sm:$0xff] }
   0x2   :  { %53 = vmatpush.bf16.msra.mxu0 %v134_v0 }
   0x3   :  { %10 = vsyncpa [#allocation3], 0  ;;  %v22_v2 = vld [vmem:[%s223_s0] sm:$0x1]  ;;  %vm43_vm0 = vcmask 261120   ;;  %v136_v3 = vld [vmem:[%s226_s3 + $0x8] sm:$0xff] }
   0x4   :  { %91 = vmatpush.bf16.msra.mxu1 %v136_v3  ;;  %v135_v4 = vld [vmem:[%s226_s3] sm:$0xff]  ;;  %s168_s30 = smov [#allocation2]   ;;  %s106_s8 = sshll.u32 %s228_s5, 4  ;;  %s107_s8 = int_to_ptr.hbm [resolvable:$true] %s106_s8 }
   0x5   :  { %v138_v5 = vld [vmem:[%s225_s2] ss:$0 sm:$0xff]  ;;  %s104_s6 = sshll.u32 %s168_s30, 4  ;;  %s105_s6 = int_to_ptr.vmem [resolvable:$true] %s104_s6 }
   0x6   :  { %54 = vmatpush.bf16.msra.mxu0 %v133_v1  ;;  %v139_v11 = vld [vmem:[%s227_s4] ss:$0 sm:$0xff] }
   0x8   :  { %92 = vmatpush.bf16.msra.mxu1 %v135_v4 }
   0x9   :  { %123 = vmatmul.msk.bf16.vlgmr.msra.gmra.mxu0 %vm43_vm0, %v22_v2 }
  0x86   :  { %v56_v6 = vpop.f32.mrf.mxu0 }
  0x87   :  { %v57_v7 = vadd.f32 %v138_v5, %v56_v6 }
  0x89   :  { %140 = vtanh.f32 %v57_v7 }
  0x8e   :  { %v58_v8 = vpop.f32.mrf.mxu0 }
  0x8f   :  { %v141_v9 = vpop.eup %140 }
  0x90   :  { %v61_v10 = vpack.c.bf16 %v141_v9, %v141_v9 }
  0x92   :  { %132 = vmatmul.msk.bf16.vlgmr.msra.gmra.mxu1 %vm43_vm0, %v61_v10 }
 0x10f   :  { %v94_v12 = vpop.f32.mrf.mxu1 }
 0x110   :  { %v95_v13 = vadd.f32 %v139_v11, %v94_v12 }
 0x112   :  { %98 = vst [vmem:[#allocation2] sm:$0x3] %v95_v13 }
 0x113   :  { %109 = dma.vmem_to_hbm [thread:$0]  %s105_s6, 32, %s107_s8, [#allocation3]  }
 0x117   :  { %v96_v14 = vpop.f32.mrf.mxu1 }
 0x118   :  { %166 = dma.done.wait [#allocation3], 32  }
 0x119   :  { %167 = vsyncadd [#allocation3], 4294967264 }
 0x11a   :  { %114 = vsyncpa [#allocation3], 1 }

// kernel: roberta_classifier_forward.14
= control target key start
LH: loop header
LB: loop body
LE: loop exit
PB: predicated region body
PF: predicated region fallthrough
CT: control target
= control target key end

     0   :  { %vm31_vm0 = vcmask 261120   ;;  %v366_v50 = vmov 0.0   ;;  %vm202_vm9 = vcmask 523264   ;;  %vm304_vm15 = vcmask 257024   ;;  %s477_s1 = inlined_call_operand.vmem [shape: bf16[32,64], index: 1, kind: input, shape index: {}]   ;;  %s478_s2 = inlined_call_operand.vmem [shape: f32[1,64], index: 2, kind: input, shape index: {}]   ;;  %s479_s0 = inlined_call_operand.vmem [shape: bf16[16,32], index: 0, kind: input, shape index: {}]   ;;  %s480_s3 = inlined_call_operand.vmem [shape: bf16[64,32], index: 3, kind: input, shape index: {}]   ;;  %s481_s4 = inlined_call_operand.vmem [shape: f32[1,32], index: 4, kind: input, shape index: {}]   ;;  %s482_s5 = inlined_call_operand.vmem [shape: f32[1,32], index: 5, kind: input, shape index: {}]   ;;  %s483_s6 = inlined_call_operand.vmem [shape: f32[1,32], index: 6, kind: input, shape index: {}]   ;;  %s484_s7 = inlined_call_operand.vmem [shape: bf16[16,32], index: 7, kind: output, shape index: {}]  }
   0x1   :  { %v345_v0 = vld [vmem:[%s477_s1 + $0x8] sm:$0xff]  ;;  %v344_v1 = vld [vmem:[%s477_s1] sm:$0xff]  ;;  %v349_v22 = vld [vmem:[%s480_s3 + $0x18] sm:$0xff]  ;;  %32 = vst.msk [vmem:[#allocation2] sm:$0xff] %vm31_vm0, %v366_v50 }
   0x2   :  { %71 = vmatpush.bf16.msra.mxu0 %v345_v0  ;;  %v343_v2 = vld [vmem:[%s479_s0] sm:$0xff]  ;;  %210 = vmatpush.bf16.msra.mxu1 %v349_v22  ;;  %v348_v30 = vld [vmem:[%s480_s3 + $0x10] sm:$0xff]  ;;  %v347_v38 = vld [vmem:[%s480_s3 + $0x8] sm:$0xff]  ;;  %33 = vst.msk [vmem:[#allocation2 + $0x8] sm:$0xff] %vm31_vm0, %v366_v50 }
   0x3   :  { %v352_v3 = vld [vmem:[%s478_s2] ss:$0 sm:$0xff] }
   0x4   :  { %v346_v44 = vld [vmem:[%s480_s3] sm:$0xff] }
   0x6   :  { %72 = vmatpush.bf16.msra.mxu0 %v344_v1  ;;  %211 = vmatpush.bf16.msra.mxu1 %v348_v30 }
   0x9   :  { %323 = vmatmul.msk.bf16.vlgmr.msra.gmra.mxu0 %vm31_vm0, %v343_v2 }
   0xa   :  { %212 = vmatpush.bf16.msra.mxu1 %v347_v38 }
   0xe   :  { %213 = vmatpush.bf16.msra.mxu1 %v346_v44 }
  0x86   :  { %v74_v4 = vpop.f32.mrf.mxu0 }
  0x87   :  { %v421_v5 = vadd.f32 %v352_v3, %v74_v4 }
  0x89   :  { %v424_v6 = vmul.f32 0.70710677, %v421_v5 }
  0x8b   :  { %v83_v7 = vmul.f32 %v424_v6, %v424_v6 }
  0x8d   :  { %v84_v8 = vmin.f32 %v83_v7, 16.0 }
  0x8e   :  { %v76_v9 = vpop.f32.mrf.mxu0 }
  0x8f   :  { %v85_v10 = vmul.f32 2.1237322e-06, %v84_v8  ;;  %v96_v11 = vmul.f32 3.8918573e-05, %v84_v8  ;;  %v428_v12 = vadd.f32 %v352_v3, %v76_v9 }
  0x91   :  { %v86_v13 = vadd.f32 0.00028619796, %v85_v10  ;;  %v97_v14 = vadd.f32 0.001143296, %v96_v11  ;;  %v431_v15 = vmul.f32 0.70710677, %v428_v12 }
  0x93   :  { %v98_v16 = vmul.f32 %v97_v14, %v84_v8  ;;  %v123_v17 = vmul.f32 %v431_v15, %v431_v15  ;;  %v87_v18 = vmul.f32 %v86_v13, %v84_v8 }
  0x95   :  { %v99_v19 = vadd.f32 0.014752088, %v98_v16  ;;  %v124_v20 = vmin.f32 %v123_v17, 16.0  ;;  %v88_v25 = vadd.f32 0.0036580483, %v87_v18 }
  0x97   :  { %v100_v21 = vmul.f32 %v99_v19, %v84_v8  ;;  %v125_v23 = vmul.f32 2.1237322e-06, %v124_v20  ;;  %v136_v24 = vmul.f32 3.8918573e-05, %v124_v20  ;;  %v89_v33 = vmul.f32 %v88_v25, %v84_v8 }
  0x98   :  { %v79_v25 = vmul.f32 0.5, %v421_v5  ;;  %v353_v5 = vld [vmem:[%s481_s4] ss:$0 sm:$0xff] }
  0x99   :  { %v101_v26 = vadd.f32 0.112945676, %v100_v21  ;;  %v126_v27 = vadd.f32 0.00028619796, %v125_v23  ;;  %v137_v28 = vadd.f32 0.001143296, %v136_v24 }
  0x9a   :  { %v90_v40 = vadd.f32 0.05243302, %v89_v33 }
  0x9b   :  { %v102_v29 = vmul.f32 %v101_v26, %v84_v8  ;;  %v127_v31 = vmul.f32 %v126_v27, %v124_v20  ;;  %v138_v32 = vmul.f32 %v137_v28, %v124_v20  ;;  %v80_v26 = vmul.f32 0.5, %v428_v12 }
  0x9c   :  { %v91_v46 = vmul.f32 %v90_v40, %v84_v8 }
  0x9d   :  { %v103_v34 = vadd.f32 0.4994258, %v102_v29  ;;  %v128_v35 = vadd.f32 0.0036580483, %v127_v31  ;;  %v139_v36 = vadd.f32 0.014752088, %v138_v32 }
  0x9e   :  { %v92_v52 = vadd.f32 0.18741608, %v91_v46  ;;  %v167_v31 = vld [vmem:[#allocation2] sm:$0xff]  ;;  %v367_v46 = vmov 32.0  }
  0x9f   :  { %v104_v37 = vmul.f32 %v103_v34, %v84_v8  ;;  %v140_v39 = vmul.f32 %v139_v36, %v124_v20  ;;  %v129_v42 = vmul.f32 %v128_v35, %v124_v20  ;;  %v34_v34 = vld [vmem:[%s479_s0] sm:$0xff]  }
  0xa0   :  { %v93_v57 = vmul.f32 %v92_v52, %v84_v8  ;;  %v235_v36 = vunpack.c.l.bf16 %v34_v34 }
  0xa1   :  { %v105_v41 = vadd.f32 1.0, %v104_v37  ;;  %v141_v43 = vadd.f32 0.112945676, %v140_v39  ;;  %v130_v47 = vadd.f32 0.05243302, %v129_v42 }
  0xa2   :  { %v94_v63 = vadd.f32 1.1283791, %v93_v57 }
  0xa3   :  { %356 = vrcp.f32 %v105_v41  ;;  %v142_v45 = vmul.f32 %v141_v43, %v124_v20  ;;  %v131_v54 = vmul.f32 %v130_v47, %v124_v20  ;;  %v117_v59 = vand.u32 2147483648, %v105_v41 }
  0xa4   :  { %v115_v61 = vand.u32 2147483647, %v105_v41  ;;  %vm111_vm2 = vweird.f32 %v105_v41  ;;  %v95_v9 = vmul.f32 %v94_v63, %v424_v6 }
  0xa5   :  { %v143_v48 = vadd.f32 0.4994258, %v142_v45  ;;  %v132_v60 = vadd.f32 0.18741608, %v131_v54  ;;  %v118_v2 = vor.u32 1.1754944e-38, %v117_v59 }
  0xa6   :  { %vm116_vm4 = vcmp.eq.f32.partialorder %v115_v61, 8.507059e+37 }
  0xa7   :  { %v144_v49 = vmul.f32 %v143_v48, %v124_v20  ;;  %v133_v3 = vmul.f32 %v132_v60, %v124_v20 }
  0xa9   :  { %v357_v51 = vpop.eup %356  ;;  %v145_v55 = vadd.f32 1.0, %v144_v49  ;;  %v134_v8 = vadd.f32 1.1283791, %v133_v3 }
  0xaa   :  { %v107_v53 = vmul.f32 %v357_v51, %v105_v41  ;;  %vm112_vm1 = vweird.f32 %v357_v51  ;;  %v236_v41 = vunpack.c.h.bf16 %v34_v34 }
  0xab   :  { %358 = vrcp.f32 %v145_v55  ;;  %vm113_vm3 = vmor %vm111_vm2, %vm112_vm1  ;;  %v157_v11 = vand.u32 2147483648, %v145_v55  ;;  %v155_v16 = vand.u32 2147483647, %v145_v55  ;;  %vm151_vm6 = vweird.f32 %v145_v55 }
  0xac   :  { %v108_v56 = vsub.f32 1.0, %v107_v53  ;;  %v135_v21 = vmul.f32 %v134_v8, %v431_v15  ;;  %v168_v15 = vld [vmem:[#allocation2 + $0x8] sm:$0xff]  ;;  %360 = vrcp.f32 %v367_v46 }
  0xad   :  { %v158_v18 = vor.u32 1.1754944e-38, %v157_v11  ;;  %vm156_vm8 = vcmp.eq.f32.partialorder %v155_v16, 8.507059e+37 }
  0xae   :  { %v109_v58 = vmul.f32 %v357_v51, %v108_v56 }
  0xb0   :  { %v110_v62 = vadd.f32 %v357_v51, %v109_v58 }
  0xb1   :  { %v359_v0 = vpop.eup %358 }
  0xb2   :  { %v114_v1 = vsel %vm113_vm3, %v357_v51, %v110_v62  ;;  %v147_v4 = vmul.f32 %v359_v0, %v145_v55  ;;  %vm152_vm5 = vweird.f32 %v359_v0  ;;  %v361_v47 = vpop.eup %360 }
  0xb3   :  { %v119_v7 = vsel %vm116_vm4, %v118_v2, %v114_v1  ;;  %vm153_vm7 = vmor %vm151_vm6, %vm152_vm5  ;;  %v246_v48 = vmul.f32 32.0, %v361_v47  ;;  %vm250_vm10 = vweird.f32 %v361_v47 }
  0xb4   :  { %v148_v10 = vsub.f32 1.0, %v147_v4  ;;  %v120_v13 = vmul.f32 %v119_v7, %v95_v9 }
  0xb5   :  { %v247_v49 = vsub.f32 1.0, %v246_v48 }
  0xb6   :  { %v149_v14 = vmul.f32 %v359_v0, %v148_v10  ;;  %v324_v19 = vclamps-f32 %v120_v13, 1.0 }
  0xb7   :  { %v248_v50 = vmul.f32 %v361_v47, %v247_v49 }
  0xb8   :  { %v150_v17 = vadd.f32 %v359_v0, %v149_v14  ;;  %v163_v24 = vadd.f32 1.0, %v324_v19 }
  0xb9   :  { %v249_v51 = vadd.f32 %v361_v47, %v248_v50 }
  0xba   :  { %v154_v20 = vsel %vm153_vm7, %v359_v0, %v150_v17  ;;  %v165_v28 = vmul.f32 %v163_v24, %v79_v25  ;;  %v354_v17 = vld [vmem:[%s482_s5] ss:$0 sm:$0xff] }
  0xbb   :  { %v159_v22 = vsel %vm156_vm8, %v158_v18, %v154_v20  ;;  %v251_v52 = vsel %vm250_vm10, %v361_v47, %v249_v51 }
  0xbc   :  { %v160_v23 = vmul.f32 %v159_v22, %v135_v21  ;;  %v355_v21 = vld [vmem:[%s483_s6] ss:$0 sm:$0xff] }
  0xbe   :  { %v325_v6 = vclamps-f32 %v160_v23, 1.0 }
  0xc0   :  { %v164_v27 = vadd.f32 1.0, %v325_v6 }
  0xc2   :  { %v166_v29 = vmul.f32 %v164_v27, %v80_v26 }
  0xc4   :  { %v169_v30 = vpack.c.bf16 %v166_v29, %v165_v28 }
  0xc6   :  { %342 = vmatmul.msk.bf16.vlgmr.msra.gmra.mxu1 %vm202_vm9, %v169_v30 }
 0x143   :  { %v215_v32 = vpop.f32.mrf.mxu1 }
 0x144   :  { %v220_v33 = vadd.f32 %v215_v32, %v167_v31 }
 0x146   :  { %222 = vst.msk [vmem:[#allocation2] sm:$0xff] %vm31_vm0, %v220_v33 }
 0x14b   :  { %v217_v12 = vpop.f32.mrf.mxu1 }
 0x14c   :  { %v221_v35 = vadd.f32 %v217_v12, %v168_v15 }
 0x14d   :  { %v227_v37 = vld [vmem:[#allocation2] sm:$0xff] }
 0x14e   :  { %223 = vst.msk [vmem:[#allocation2 + $0x8] sm:$0xff] %vm31_vm0, %v221_v35  ;;  %v233_v38 = vadd.f32 %v353_v5, %v227_v37 }
 0x150   :  { %v237_v39 = vadd.f32 %v235_v36, %v233_v38 }
 0x152   :  { %v239_v40 = vsel %vm31_vm0, %v237_v39, 0.0 }
 0x153   :  { %240 = vadd.xlane.f32.xlu0 %v239_v40 }
 0x155   :  { %v228_v42 = vld [vmem:[#allocation2 + $0x8] sm:$0xff] }
 0x156   :  { %v234_v43 = vadd.f32 %v353_v5, %v228_v42 }
 0x158   :  { %v238_v44 = vadd.f32 %v236_v41, %v234_v43 }
 0x15a   :  { %v242_v45 = vsel %vm31_vm0, %v238_v44, 0.0 }
 0x15b   :  { %243 = vadd.xlane.f32.xlu0 %v242_v45 }
 0x1c6   :  { %v241_v53 = vpop.xlane.xlu0 %240 }
 0x1c7   :  { %v252_v54 = vmul.f32 %v251_v52, %v241_v53 }
 0x1c9   :  { %v254_v55 = vsub.f32 %v237_v39, %v252_v54 }
 0x1cb   :  { %v256_v56 = vmul.f32 %v254_v55, %v254_v55 }
 0x1cd   :  { %v258_v57 = vsel %vm31_vm0, %v256_v56, 0.0 }
 0x1ce   :  { %259 = vadd.xlane.f32.xlu1 %v258_v57  ;;  %v244_v58 = vpop.xlane.xlu0 %243 }
 0x1cf   :  { %v253_v59 = vmul.f32 %v251_v52, %v244_v58 }
 0x1d1   :  { %v255_v60 = vsub.f32 %v238_v44, %v253_v59 }
 0x1d3   :  { %v257_v61 = vmul.f32 %v255_v60, %v255_v60 }
 0x1d5   :  { %v261_v62 = vsel %vm31_vm0, %v257_v61, 0.0 }
 0x1d6   :  { %262 = vadd.xlane.f32.xlu1 %v261_v62 }
 0x241   :  { %v260_v63 = vpop.xlane.xlu1 %259 }
 0x242   :  { %v264_v0 = vmul.f32 %v260_v63, %v251_v52 }
 0x244   :  { %v266_v1 = vadd.f32 1e-05, %v264_v0 }
 0x246   :  { %362 = vrsqrt.f32 %v266_v1  ;;  %vm274_vm12 = vweird.f32 %v266_v1 }
 0x249   :  { %v263_v2 = vpop.xlane.xlu1 %262 }
 0x24a   :  { %v265_v3 = vmul.f32 %v263_v2, %v251_v52 }
 0x24c   :  { %v363_v4 = vpop.eup %362  ;;  %v267_v7 = vadd.f32 1e-05, %v265_v3 }
 0x24d   :  { %v269_v9 = vmul.f32 %v363_v4, %v266_v1  ;;  %vm275_vm11 = vweird.f32 %v363_v4 }
 0x24e   :  { %364 = vrsqrt.f32 %v267_v7  ;;  %vm276_vm13 = vmor %vm274_vm12, %vm275_vm11  ;;  %vm284_vm0 = vweird.f32 %v267_v7 }
 0x24f   :  { %v270_v10 = vmul.f32 %v363_v4, %v269_v9 }
 0x251   :  { %v271_v8 = vmul.f32 0.5, %v270_v10 }
 0x253   :  { %v272_v11 = vsub.f32 1.5, %v271_v8 }
 0x254   :  { %v365_v13 = vpop.eup %364 }
 0x255   :  { %v273_v14 = vmul.f32 %v363_v4, %v272_v11  ;;  %v279_v16 = vmul.f32 %v365_v13, %v267_v7  ;;  %vm285_vm14 = vweird.f32 %v365_v13 }
 0x256   :  { %vm286_vm1 = vmor %vm284_vm0, %vm285_vm14 }
 0x257   :  { %v277_v18 = vsel %vm276_vm13, %v363_v4, %v273_v14  ;;  %v280_v19 = vmul.f32 %v365_v13, %v279_v16 }
 0x258   :  { %v288_v20 = vmul.f32 %v277_v18, %v254_v55 }
 0x259   :  { %v281_v22 = vmul.f32 0.5, %v280_v19 }
 0x25a   :  { %v294_v23 = vmul.f32 %v354_v17, %v288_v20 }
 0x25b   :  { %v282_v24 = vsub.f32 1.5, %v281_v22 }
 0x25c   :  { %v300_v6 = vadd.f32 %v355_v21, %v294_v23 }
 0x25d   :  { %v283_v25 = vmul.f32 %v365_v13, %v282_v24 }
 0x25e   :  { %v302_v26 = vpack.c.bf16 %v300_v6, %v300_v6 }
 0x25f   :  { %v287_v27 = vsel %vm286_vm1, %v365_v13, %v283_v25 }
 0x260   :  { %305 = vst.msk [vmem:[%s484_s7] sm:$0xf] %vm304_vm15, %v302_v26  ;;  %v289_v28 = vmul.f32 %v287_v27, %v255_v60 }
 0x262   :  { %v295_v29 = vmul.f32 %v354_v17, %v289_v28 }
 0x264   :  { %v301_v30 = vadd.f32 %v355_v21, %v295_v29 }
 0x266   :  { %v303_v31 = vpack.c.bf16 %v301_v30, %v301_v30 }
 0x268   :  { %306 = vst.msk [vmem:[%s484_s7 + $0x4] sm:$0xf] %vm304_vm15, %v303_v31 }

</bundles_post_ra>
